<compile_context>
chip_gen: v7x
topology: tpu7x:2x2x1
jax: 0.10.0
libtpu: 0.0.40
codegen_flags: <defaults>
</compile_context>

<pallas_src>
import functools

import jax
import jax.numpy as jnp
from jax import lax
from jax.experimental import pallas as pl
from jax.experimental.pallas import tpu as pltpu

LANE = 128      # TPU lane width (last-dim vreg extent)
SUBLANE = 8     # f32 sublane tile / rows per accumulator sub-tile
TB_MAX = 128    # max batch rows per grid step (one full MXU M tile)

# Flipped to False at runtime if this jax build rejects pipeline_mode.
_SINGLE_BUFFER_INVARIANTS = True


def _round_up(n, m):
    return ((n + m - 1) // m) * m


def _pick_batch_tile(b):
    """Batch rows per grid step: as close to 128 as the batch allows, but keep
    >=2 grid steps when the batch is big enough so dimension_semantics=
    ('parallel',) can shard across v7x's two TensorCores."""
    tb = min(TB_MAX, _round_up(max(b, SUBLANE), SUBLANE))
    if _round_up(b, tb) // tb < 2 and b >= 4 * SUBLANE:
        tb = _round_up((b + 1) // 2, SUBLANE)
    return tb


def nbow_kernel(ids_ref, emb_ref, w_ref, b_ref, out_ref, pooled_ref, *, seq_len):
    # ids_ref    : SMEM [Bp*S]  int32   (scalar-prefetched, flattened)
    # emb_ref    : VMEM [V,  Dp]        embedding table (f32 or bf16), grid-invariant
    # w_ref      : VMEM [Dp, Op] f32    fc.weight^T with 1/S folded in, grid-invariant
    # b_ref      : VMEM [1,  Op] f32    bias, grid-invariant
    # out_ref    : VMEM [TB, Op] f32    output tile
    # pooled_ref : VMEM [TB, Dp] f32    scratch: per-row token sums
    tb = out_ref.shape[0]
    dp = emb_ref.shape[1]
    n_sub = tb // SUBLANE
    base = pl.program_id(0) * tb

    def sub_tile(t, carry):
        row0 = base + t * SUBLANE

        def tok_step(s, accs):
            # SUBLANE independent gather+add chains so the SMEM id reads, the
            # VMEM row loads and the VALU adds can co-issue instead of
            # serializing one dependence chain.
            return tuple(
                accs[j]
                + emb_ref[pl.ds(ids_ref[(row0 + j) * seq_len + s], 1), :]
                .astype(jnp.float32)
                for j in range(SUBLANE)
            )

        init = tuple(jnp.zeros((1, dp), jnp.float32) for _ in range(SUBLANE))
        accs = lax.fori_loop(0, seq_len, tok_step, init,
                             unroll=min(seq_len, 8))
        off = pl.multiple_of(t * SUBLANE, SUBLANE)
        pooled_ref[pl.ds(off, SUBLANE), :] = jnp.concatenate(accs, axis=0)
        return carry

    # Sub-tiling bounds live vregs to ~SUBLANE accumulators even at TB=128
    # (TB independent chains would need more than the 64-entry vreg file).
    lax.fori_loop(0, n_sub, sub_tile, 0, unroll=min(n_sub, 2))

    # One (TB, Dp) @ (Dp, Op) MXU matmul; mean's 1/S already folded into W^T.
    out = jnp.dot(pooled_ref[...], w_ref[...],
                  preferred_element_type=jnp.float32)
    out_ref[...] = (out + b_ref[...]).astype(out_ref.dtype)


def nbow_forward(ids, emb_table, fc_w, fc_b, *, table_dtype=jnp.float32):
    """ids: [B,S] int; emb_table: [V,D]; fc_w: [O,D] (torch layout); fc_b: [O]."""
    global _SINGLE_BUFFER_INVARIANTS

    B, S = ids.shape
    V, D = emb_table.shape
    O = fc_w.shape[0]

    TB = _pick_batch_tile(B)
    Bp = _round_up(max(B, TB), TB)      # batch padded to the tile
    Dp = _round_up(D, LANE)             # lane-dense embedding dim
    Op = _round_up(O, LANE)             # lane-dense output dim

    # Clamp ids so no token can cause a silent OOB VMEM read (PyTorch would
    # raise for out-of-range ids; here they map to row V-1).  Padded batch
    # rows use id 0; their outputs are discarded.  Flatten to 1-D so SMEM
    # isn't padded to 128 words per row.
    ids32 = jnp.clip(ids.astype(jnp.int32), 0, V - 1)
    ids_flat = jnp.zeros((Bp * S,), jnp.int32).at[: B * S].set(ids32.reshape(-1))

    # Lane-dense zero-padded operands.  Table optionally bf16 (halves VMEM /
    # DMA traffic); accumulation stays f32 inside the kernel.
    emb_p = jnp.zeros((V, Dp), table_dtype).at[:, :D].set(
        emb_table.astype(table_dtype))
    # Fold the mean's 1/S into W^T so the kernel skips the scale multiply.
    w_t = jnp.zeros((Dp, Op), jnp.float32).at[:D, :O].set(
        fc_w.astype(jnp.float32).T / jnp.float32(S))
    b_p = jnp.zeros((1, Op), jnp.float32).at[0, :O].set(
        fc_b.astype(jnp.float32))

    # VMEM budget: single-buffered invariants + double-buffered output tile +
    # pooled scratch, x2 slack; clamp to every generation's scoped/physical range.
    resident = (emb_p.size * emb_p.dtype.itemsize
                + w_t.size * 4 + b_p.size * 4
                + 2 * TB * Op * 4 + TB * Dp * 4)
    vmem_limit = int(min(64 * 2**20, max(32 * 2**20, 2 * resident)))

    cost = pl.CostEstimate(
        flops=int(2 * Bp * Dp * Op + Bp * S * Dp),
        transcendentals=0,
        bytes_accessed=int(emb_p.size * emb_p.dtype.itemsize + w_t.size * 4
                           + b_p.size * 4 + ids_flat.size * 4 + Bp * Op * 4),
    )

    def run(single_buffer):
        # Grid-invariant inputs (index_map constant) only need one buffer.
        extra = {"pipeline_mode": pl.Buffered(1)} if single_buffer else {}
        grid_spec = pltpu.PrefetchScalarGridSpec(
            num_scalar_prefetch=1,                          # ids -> SMEM
            grid=(Bp // TB,),
            in_specs=[
                pl.BlockSpec((V, Dp), lambda i, _: (0, 0), **extra),   # table
                pl.BlockSpec((Dp, Op), lambda i, _: (0, 0), **extra),  # W^T (scaled)
                pl.BlockSpec((1, Op), lambda i, _: (0, 0), **extra),   # bias
            ],
            out_specs=pl.BlockSpec((TB, Op), lambda i, _: (i, 0)),
            scratch_shapes=[pltpu.VMEM((TB, Dp), jnp.float32)],
        )
        return pl.pallas_call(
            functools.partial(nbow_kernel, seq_len=S),
            out_shape=jax.ShapeDtypeStruct((Bp, Op), jnp.float32),
            grid_spec=grid_spec,
            compiler_params=pltpu.CompilerParams(
                dimension_semantics=("parallel",),           # batch tiles independent
                vmem_limit_bytes=vmem_limit),
            cost_estimate=cost,
        )(ids_flat, emb_p, w_t, b_p)

    if _SINGLE_BUFFER_INVARIANTS:
        try:
            out_p = run(True)
        except Exception:
            # pipeline_mode=pl.Buffered(1) not supported by this build; fall
            # back to default (double-buffered) pipelining of the invariants.
            _SINGLE_BUFFER_INVARIANTS = False
            out_p = run(False)
    else:
        out_p = run(False)

    return out_p[:B, :O]


if __name__ == "__main__":
    # Small, deterministic setup consistent with NBoW.__init__
    vocab_size, embedding_dim, output_dim, pad_index = 100, 32, 8, 0
    batch, seq = 2, 8

    key = jax.random.PRNGKey(0)
    k_emb, k_w, k_b, k_ids = jax.random.split(key, 4)

    emb_table = jax.random.normal(k_emb, (vocab_size, embedding_dim),
                                  dtype=jnp.float32)
    # nn.Embedding(padding_idx=pad_index) zeroes the pad row.
    emb_table = emb_table.at[pad_index].set(0.0)

    fc_w = jax.random.normal(k_w, (output_dim, embedding_dim),
                             dtype=jnp.float32) * 0.1
    fc_b = jax.random.normal(k_b, (output_dim,), dtype=jnp.float32) * 0.1

    ids = jax.random.randint(k_ids, (batch, seq), 0, vocab_size,
                             dtype=jnp.int32)
    length = jnp.full((batch,), seq, dtype=jnp.int32)  # unused by forward

    # Check 1: tiny batch, f32 table, against the pure-JAX reference.
    out = nbow_forward(ids, emb_table, fc_w, fc_b)
    jax.block_until_ready(out)
    ref = jnp.mean(emb_table[ids], axis=1) @ fc_w.T + fc_b
    assert jnp.allclose(out, ref, atol=1e-5, rtol=1e-5), (out, ref)

    # Check 2: larger batch/seq exercises TB=128, a multi-step grid, the
    # sub-tile accumulation loop and the bf16-table path.
    batch2, seq2 = 300, 24
    ids2 = jax.random.randint(jax.random.PRNGKey(1), (batch2, seq2), 0,
                              vocab_size, dtype=jnp.int32)
    out2 = nbow_forward(ids2, emb_table, fc_w, fc_b,
                        table_dtype=jnp.bfloat16)
    jax.block_until_ready(out2)
    emb_bf = emb_table.astype(jnp.bfloat16).astype(jnp.float32)
    ref2 = jnp.mean(emb_bf[ids2], axis=1) @ fc_w.T + fc_b
    assert jnp.allclose(out2, ref2, atol=1e-4, rtol=1e-4), (out2, ref2)

    print("KERNEL_OK")
</pallas_src>

<mosaic_0001>
module attributes {stable_mosaic.version = 11 : i64} {
  func.func @nbow_kernel(%arg0: i32, %arg1: memref<64xi32, #tpu.memory_space<smem>>, %arg2: memref<100x128xf32, #tpu.memory_space<vmem>>, %arg3: memref<128x128xf32, #tpu.memory_space<vmem>>, %arg4: memref<1x128xf32, #tpu.memory_space<vmem>>, %arg5: memref<8x128xf32, #tpu.memory_space<vmem>>, %arg6: memref<8x128xf32, #tpu.memory_space<vmem>>) attributes {dimension_semantics = [#tpu.dimension_semantics<parallel>], iteration_bounds = array<i64: 1>, scalar_prefetch = 1 : i64, scratch_operands = 1 : i64, tpu.core_type = #tpu.core_type<tc>, window_params = [{pipeline_mode = #tpu.pipeline_mode<synchronous>, transform_indices = @transform_0, window_bounds = array<i64: 100, 128>}, {pipeline_mode = #tpu.pipeline_mode<synchronous>, transform_indices = @transform_1, window_bounds = array<i64: 128, 128>}, {pipeline_mode = #tpu.pipeline_mode<synchronous>, transform_indices = @transform_2, window_bounds = array<i64: 1, 128>}, {transform_indices = @transform_3, window_bounds = array<i64: 8, 128>}]} {
    %c8_i32 = arith.constant 8 : i32
    %0 = arith.muli %arg0, %c8_i32 : i32
    %c0_i32 = arith.constant 0 : i32
    %c8_i32_0 = arith.constant 8 : i32
    %1 = arith.muli %c0_i32, %c8_i32_0 : i32
    %2 = arith.addi %0, %1 : i32
    %cst = arith.constant 0.000000e+00 : f32
    %3 = vector.broadcast %cst : f32 to vector<1x128xf32>
    %cst_1 = arith.constant 0.000000e+00 : f32
    %4 = vector.broadcast %cst_1 : f32 to vector<1x128xf32>
    %cst_2 = arith.constant 0.000000e+00 : f32
    %5 = vector.broadcast %cst_2 : f32 to vector<1x128xf32>
    %cst_3 = arith.constant 0.000000e+00 : f32
    %6 = vector.broadcast %cst_3 : f32 to vector<1x128xf32>
    %cst_4 = arith.constant 0.000000e+00 : f32
    %7 = vector.broadcast %cst_4 : f32 to vector<1x128xf32>
    %cst_5 = arith.constant 0.000000e+00 : f32
    %8 = vector.broadcast %cst_5 : f32 to vector<1x128xf32>
    %cst_6 = arith.constant 0.000000e+00 : f32
    %9 = vector.broadcast %cst_6 : f32 to vector<1x128xf32>
    %cst_7 = arith.constant 0.000000e+00 : f32
    %10 = vector.broadcast %cst_7 : f32 to vector<1x128xf32>
    %c0_i32_8 = arith.constant 0 : i32
    %c0_i32_9 = arith.constant 0 : i32
    %11 = arith.addi %2, %c0_i32_9 : i32
    %c8_i32_10 = arith.constant 8 : i32
    %12 = arith.muli %11, %c8_i32_10 : i32
    %13 = arith.addi %12, %c0_i32_8 : i32
    %14 = arith.index_cast %13 : i32 to index
    %15 = memref.load %arg1[%14] : memref<64xi32, #tpu.memory_space<smem>>
    %16 = arith.index_cast %15 : i32 to index
    %c0 = arith.constant 0 : index
    %17 = vector.load %arg2[%16, %c0] : memref<100x128xf32, #tpu.memory_space<vmem>>, vector<1x128xf32>
    %18 = arith.addf %3, %17 : vector<1x128xf32>
    %c1_i32 = arith.constant 1 : i32
    %19 = arith.addi %2, %c1_i32 : i32
    %c8_i32_11 = arith.constant 8 : i32
    %20 = arith.muli %19, %c8_i32_11 : i32
    %21 = arith.addi %20, %c0_i32_8 : i32
    %22 = arith.index_cast %21 : i32 to index
    %23 = memref.load %arg1[%22] : memref<64xi32, #tpu.memory_space<smem>>
    %24 = arith.index_cast %23 : i32 to index
    %c0_12 = arith.constant 0 : index
    %25 = vector.load %arg2[%24, %c0_12] : memref<100x128xf32, #tpu.memory_space<vmem>>, vector<1x128xf32>
    %26 = arith.addf %4, %25 : vector<1x128xf32>
    %c2_i32 = arith.constant 2 : i32
    %27 = arith.addi %2, %c2_i32 : i32
    %c8_i32_13 = arith.constant 8 : i32
    %28 = arith.muli %27, %c8_i32_13 : i32
    %29 = arith.addi %28, %c0_i32_8 : i32
    %30 = arith.index_cast %29 : i32 to index
    %31 = memref.load %arg1[%30] : memref<64xi32, #tpu.memory_space<smem>>
    %32 = arith.index_cast %31 : i32 to index
    %c0_14 = arith.constant 0 : index
    %33 = vector.load %arg2[%32, %c0_14] : memref<100x128xf32, #tpu.memory_space<vmem>>, vector<1x128xf32>
    %34 = arith.addf %5, %33 : vector<1x128xf32>
    %c3_i32 = arith.constant 3 : i32
    %35 = arith.addi %2, %c3_i32 : i32
    %c8_i32_15 = arith.constant 8 : i32
    %36 = arith.muli %35, %c8_i32_15 : i32
    %37 = arith.addi %36, %c0_i32_8 : i32
    %38 = arith.index_cast %37 : i32 to index
    %39 = memref.load %arg1[%38] : memref<64xi32, #tpu.memory_space<smem>>
    %40 = arith.index_cast %39 : i32 to index
    %c0_16 = arith.constant 0 : index
    %41 = vector.load %arg2[%40, %c0_16] : memref<100x128xf32, #tpu.memory_space<vmem>>, vector<1x128xf32>
    %42 = arith.addf %6, %41 : vector<1x128xf32>
    %c4_i32 = arith.constant 4 : i32
    %43 = arith.addi %2, %c4_i32 : i32
    %c8_i32_17 = arith.constant 8 : i32
    %44 = arith.muli %43, %c8_i32_17 : i32
    %45 = arith.addi %44, %c0_i32_8 : i32
    %46 = arith.index_cast %45 : i32 to index
    %47 = memref.load %arg1[%46] : memref<64xi32, #tpu.memory_space<smem>>
    %48 = arith.index_cast %47 : i32 to index
    %c0_18 = arith.constant 0 : index
    %49 = vector.load %arg2[%48, %c0_18] : memref<100x128xf32, #tpu.memory_space<vmem>>, vector<1x128xf32>
    %50 = arith.addf %7, %49 : vector<1x128xf32>
    %c5_i32 = arith.constant 5 : i32
    %51 = arith.addi %2, %c5_i32 : i32
    %c8_i32_19 = arith.constant 8 : i32
    %52 = arith.muli %51, %c8_i32_19 : i32
    %53 = arith.addi %52, %c0_i32_8 : i32
    %54 = arith.index_cast %53 : i32 to index
    %55 = memref.load %arg1[%54] : memref<64xi32, #tpu.memory_space<smem>>
    %56 = arith.index_cast %55 : i32 to index
    %c0_20 = arith.constant 0 : index
    %57 = vector.load %arg2[%56, %c0_20] : memref<100x128xf32, #tpu.memory_space<vmem>>, vector<1x128xf32>
    %58 = arith.addf %8, %57 : vector<1x128xf32>
    %c6_i32 = arith.constant 6 : i32
    %59 = arith.addi %2, %c6_i32 : i32
    %c8_i32_21 = arith.constant 8 : i32
    %60 = arith.muli %59, %c8_i32_21 : i32
    %61 = arith.addi %60, %c0_i32_8 : i32
    %62 = arith.index_cast %61 : i32 to index
    %63 = memref.load %arg1[%62] : memref<64xi32, #tpu.memory_space<smem>>
    %64 = arith.index_cast %63 : i32 to index
    %c0_22 = arith.constant 0 : index
    %65 = vector.load %arg2[%64, %c0_22] : memref<100x128xf32, #tpu.memory_space<vmem>>, vector<1x128xf32>
    %66 = arith.addf %9, %65 : vector<1x128xf32>
    %c7_i32 = arith.constant 7 : i32
    %67 = arith.addi %2, %c7_i32 : i32
    %c8_i32_23 = arith.constant 8 : i32
    %68 = arith.muli %67, %c8_i32_23 : i32
    %69 = arith.addi %68, %c0_i32_8 : i32
    %70 = arith.index_cast %69 : i32 to index
    %71 = memref.load %arg1[%70] : memref<64xi32, #tpu.memory_space<smem>>
    %72 = arith.index_cast %71 : i32 to index
    %c0_24 = arith.constant 0 : index
    %73 = vector.load %arg2[%72, %c0_24] : memref<100x128xf32, #tpu.memory_space<vmem>>, vector<1x128xf32>
    %74 = arith.addf %10, %73 : vector<1x128xf32>
    %c1_i32_25 = arith.constant 1 : i32
    %c0_i32_26 = arith.constant 0 : i32
    %75 = arith.addi %2, %c0_i32_26 : i32
    %c8_i32_27 = arith.constant 8 : i32
    %76 = arith.muli %75, %c8_i32_27 : i32
    %77 = arith.addi %76, %c1_i32_25 : i32
    %78 = arith.index_cast %77 : i32 to index
    %79 = memref.load %arg1[%78] : memref<64xi32, #tpu.memory_space<smem>>
    %80 = arith.index_cast %79 : i32 to index
    %c0_28 = arith.constant 0 : index
    %81 = vector.load %arg2[%80, %c0_28] : memref<100x128xf32, #tpu.memory_space<vmem>>, vector<1x128xf32>
    %82 = arith.addf %18, %81 : vector<1x128xf32>
    %c1_i32_29 = arith.constant 1 : i32
    %83 = arith.addi %2, %c1_i32_29 : i32
    %c8_i32_30 = arith.constant 8 : i32
    %84 = arith.muli %83, %c8_i32_30 : i32
    %85 = arith.addi %84, %c1_i32_25 : i32
    %86 = arith.index_cast %85 : i32 to index
    %87 = memref.load %arg1[%86] : memref<64xi32, #tpu.memory_space<smem>>
    %88 = arith.index_cast %87 : i32 to index
    %c0_31 = arith.constant 0 : index
    %89 = vector.load %arg2[%88, %c0_31] : memref<100x128xf32, #tpu.memory_space<vmem>>, vector<1x128xf32>
    %90 = arith.addf %26, %89 : vector<1x128xf32>
    %c2_i32_32 = arith.constant 2 : i32
    %91 = arith.addi %2, %c2_i32_32 : i32
    %c8_i32_33 = arith.constant 8 : i32
    %92 = arith.muli %91, %c8_i32_33 : i32
    %93 = arith.addi %92, %c1_i32_25 : i32
    %94 = arith.index_cast %93 : i32 to index
    %95 = memref.load %arg1[%94] : memref<64xi32, #tpu.memory_space<smem>>
    %96 = arith.index_cast %95 : i32 to index
    %c0_34 = arith.constant 0 : index
    %97 = vector.load %arg2[%96, %c0_34] : memref<100x128xf32, #tpu.memory_space<vmem>>, vector<1x128xf32>
    %98 = arith.addf %34, %97 : vector<1x128xf32>
    %c3_i32_35 = arith.constant 3 : i32
    %99 = arith.addi %2, %c3_i32_35 : i32
    %c8_i32_36 = arith.constant 8 : i32
    %100 = arith.muli %99, %c8_i32_36 : i32
    %101 = arith.addi %100, %c1_i32_25 : i32
    %102 = arith.index_cast %101 : i32 to index
    %103 = memref.load %arg1[%102] : memref<64xi32, #tpu.memory_space<smem>>
    %104 = arith.index_cast %103 : i32 to index
    %c0_37 = arith.constant 0 : index
    %105 = vector.load %arg2[%104, %c0_37] : memref<100x128xf32, #tpu.memory_space<vmem>>, vector<1x128xf32>
    %106 = arith.addf %42, %105 : vector<1x128xf32>
    %c4_i32_38 = arith.constant 4 : i32
    %107 = arith.addi %2, %c4_i32_38 : i32
    %c8_i32_39 = arith.constant 8 : i32
    %108 = arith.muli %107, %c8_i32_39 : i32
    %109 = arith.addi %108, %c1_i32_25 : i32
    %110 = arith.index_cast %109 : i32 to index
    %111 = memref.load %arg1[%110] : memref<64xi32, #tpu.memory_space<smem>>
    %112 = arith.index_cast %111 : i32 to index
    %c0_40 = arith.constant 0 : index
    %113 = vector.load %arg2[%112, %c0_40] : memref<100x128xf32, #tpu.memory_space<vmem>>, vector<1x128xf32>
    %114 = arith.addf %50, %113 : vector<1x128xf32>
    %c5_i32_41 = arith.constant 5 : i32
    %115 = arith.addi %2, %c5_i32_41 : i32
    %c8_i32_42 = arith.constant 8 : i32
    %116 = arith.muli %115, %c8_i32_42 : i32
    %117 = arith.addi %116, %c1_i32_25 : i32
    %118 = arith.index_cast %117 : i32 to index
    %119 = memref.load %arg1[%118] : memref<64xi32, #tpu.memory_space<smem>>
    %120 = arith.index_cast %119 : i32 to index
    %c0_43 = arith.constant 0 : index
    %121 = vector.load %arg2[%120, %c0_43] : memref<100x128xf32, #tpu.memory_space<vmem>>, vector<1x128xf32>
    %122 = arith.addf %58, %121 : vector<1x128xf32>
    %c6_i32_44 = arith.constant 6 : i32
    %123 = arith.addi %2, %c6_i32_44 : i32
    %c8_i32_45 = arith.constant 8 : i32
    %124 = arith.muli %123, %c8_i32_45 : i32
    %125 = arith.addi %124, %c1_i32_25 : i32
    %126 = arith.index_cast %125 : i32 to index
    %127 = memref.load %arg1[%126] : memref<64xi32, #tpu.memory_space<smem>>
    %128 = arith.index_cast %127 : i32 to index
    %c0_46 = arith.constant 0 : index
    %129 = vector.load %arg2[%128, %c0_46] : memref<100x128xf32, #tpu.memory_space<vmem>>, vector<1x128xf32>
    %130 = arith.addf %66, %129 : vector<1x128xf32>
    %c7_i32_47 = arith.constant 7 : i32
    %131 = arith.addi %2, %c7_i32_47 : i32
    %c8_i32_48 = arith.constant 8 : i32
    %132 = arith.muli %131, %c8_i32_48 : i32
    %133 = arith.addi %132, %c1_i32_25 : i32
    %134 = arith.index_cast %133 : i32 to index
    %135 = memref.load %arg1[%134] : memref<64xi32, #tpu.memory_space<smem>>
    %136 = arith.index_cast %135 : i32 to index
    %c0_49 = arith.constant 0 : index
    %137 = vector.load %arg2[%136, %c0_49] : memref<100x128xf32, #tpu.memory_space<vmem>>, vector<1x128xf32>
    %138 = arith.addf %74, %137 : vector<1x128xf32>
    %c2_i32_50 = arith.constant 2 : i32
    %c0_i32_51 = arith.constant 0 : i32
    %139 = arith.addi %2, %c0_i32_51 : i32
    %c8_i32_52 = arith.constant 8 : i32
    %140 = arith.muli %139, %c8_i32_52 : i32
    %141 = arith.addi %140, %c2_i32_50 : i32
    %142 = arith.index_cast %141 : i32 to index
    %143 = memref.load %arg1[%142] : memref<64xi32, #tpu.memory_space<smem>>
    %144 = arith.index_cast %143 : i32 to index
    %c0_53 = arith.constant 0 : index
    %145 = vector.load %arg2[%144, %c0_53] : memref<100x128xf32, #tpu.memory_space<vmem>>, vector<1x128xf32>
    %146 = arith.addf %82, %145 : vector<1x128xf32>
    %c1_i32_54 = arith.constant 1 : i32
    %147 = arith.addi %2, %c1_i32_54 : i32
    %c8_i32_55 = arith.constant 8 : i32
    %148 = arith.muli %147, %c8_i32_55 : i32
    %149 = arith.addi %148, %c2_i32_50 : i32
    %150 = arith.index_cast %149 : i32 to index
    %151 = memref.load %arg1[%150] : memref<64xi32, #tpu.memory_space<smem>>
    %152 = arith.index_cast %151 : i32 to index
    %c0_56 = arith.constant 0 : index
    %153 = vector.load %arg2[%152, %c0_56] : memref<100x128xf32, #tpu.memory_space<vmem>>, vector<1x128xf32>
    %154 = arith.addf %90, %153 : vector<1x128xf32>
    %c2_i32_57 = arith.constant 2 : i32
    %155 = arith.addi %2, %c2_i32_57 : i32
    %c8_i32_58 = arith.constant 8 : i32
    %156 = arith.muli %155, %c8_i32_58 : i32
    %157 = arith.addi %156, %c2_i32_50 : i32
    %158 = arith.index_cast %157 : i32 to index
    %159 = memref.load %arg1[%158] : memref<64xi32, #tpu.memory_space<smem>>
    %160 = arith.index_cast %159 : i32 to index
    %c0_59 = arith.constant 0 : index
    %161 = vector.load %arg2[%160, %c0_59] : memref<100x128xf32, #tpu.memory_space<vmem>>, vector<1x128xf32>
    %162 = arith.addf %98, %161 : vector<1x128xf32>
    %c3_i32_60 = arith.constant 3 : i32
    %163 = arith.addi %2, %c3_i32_60 : i32
    %c8_i32_61 = arith.constant 8 : i32
    %164 = arith.muli %163, %c8_i32_61 : i32
    %165 = arith.addi %164, %c2_i32_50 : i32
    %166 = arith.index_cast %165 : i32 to index
    %167 = memref.load %arg1[%166] : memref<64xi32, #tpu.memory_space<smem>>
    %168 = arith.index_cast %167 : i32 to index
    %c0_62 = arith.constant 0 : index
    %169 = vector.load %arg2[%168, %c0_62] : memref<100x128xf32, #tpu.memory_space<vmem>>, vector<1x128xf32>
    %170 = arith.addf %106, %169 : vector<1x128xf32>
    %c4_i32_63 = arith.constant 4 : i32
    %171 = arith.addi %2, %c4_i32_63 : i32
    %c8_i32_64 = arith.constant 8 : i32
    %172 = arith.muli %171, %c8_i32_64 : i32
    %173 = arith.addi %172, %c2_i32_50 : i32
    %174 = arith.index_cast %173 : i32 to index
    %175 = memref.load %arg1[%174] : memref<64xi32, #tpu.memory_space<smem>>
    %176 = arith.index_cast %175 : i32 to index
    %c0_65 = arith.constant 0 : index
    %177 = vector.load %arg2[%176, %c0_65] : memref<100x128xf32, #tpu.memory_space<vmem>>, vector<1x128xf32>
    %178 = arith.addf %114, %177 : vector<1x128xf32>
    %c5_i32_66 = arith.constant 5 : i32
    %179 = arith.addi %2, %c5_i32_66 : i32
    %c8_i32_67 = arith.constant 8 : i32
    %180 = arith.muli %179, %c8_i32_67 : i32
    %181 = arith.addi %180, %c2_i32_50 : i32
    %182 = arith.index_cast %181 : i32 to index
    %183 = memref.load %arg1[%182] : memref<64xi32, #tpu.memory_space<smem>>
    %184 = arith.index_cast %183 : i32 to index
    %c0_68 = arith.constant 0 : index
    %185 = vector.load %arg2[%184, %c0_68] : memref<100x128xf32, #tpu.memory_space<vmem>>, vector<1x128xf32>
    %186 = arith.addf %122, %185 : vector<1x128xf32>
    %c6_i32_69 = arith.constant 6 : i32
    %187 = arith.addi %2, %c6_i32_69 : i32
    %c8_i32_70 = arith.constant 8 : i32
    %188 = arith.muli %187, %c8_i32_70 : i32
    %189 = arith.addi %188, %c2_i32_50 : i32
    %190 = arith.index_cast %189 : i32 to index
    %191 = memref.load %arg1[%190] : memref<64xi32, #tpu.memory_space<smem>>
    %192 = arith.index_cast %191 : i32 to index
    %c0_71 = arith.constant 0 : index
    %193 = vector.load %arg2[%192, %c0_71] : memref<100x128xf32, #tpu.memory_space<vmem>>, vector<1x128xf32>
    %194 = arith.addf %130, %193 : vector<1x128xf32>
    %c7_i32_72 = arith.constant 7 : i32
    %195 = arith.addi %2, %c7_i32_72 : i32
    %c8_i32_73 = arith.constant 8 : i32
    %196 = arith.muli %195, %c8_i32_73 : i32
    %197 = arith.addi %196, %c2_i32_50 : i32
    %198 = arith.index_cast %197 : i32 to index
    %199 = memref.load %arg1[%198] : memref<64xi32, #tpu.memory_space<smem>>
    %200 = arith.index_cast %199 : i32 to index
    %c0_74 = arith.constant 0 : index
    %201 = vector.load %arg2[%200, %c0_74] : memref<100x128xf32, #tpu.memory_space<vmem>>, vector<1x128xf32>
    %202 = arith.addf %138, %201 : vector<1x128xf32>
    %c3_i32_75 = arith.constant 3 : i32
    %c0_i32_76 = arith.constant 0 : i32
    %203 = arith.addi %2, %c0_i32_76 : i32
    %c8_i32_77 = arith.constant 8 : i32
    %204 = arith.muli %203, %c8_i32_77 : i32
    %205 = arith.addi %204, %c3_i32_75 : i32
    %206 = arith.index_cast %205 : i32 to index
    %207 = memref.load %arg1[%206] : memref<64xi32, #tpu.memory_space<smem>>
    %208 = arith.index_cast %207 : i32 to index
    %c0_78 = arith.constant 0 : index
    %209 = vector.load %arg2[%208, %c0_78] : memref<100x128xf32, #tpu.memory_space<vmem>>, vector<1x128xf32>
    %210 = arith.addf %146, %209 : vector<1x128xf32>
    %c1_i32_79 = arith.constant 1 : i32
    %211 = arith.addi %2, %c1_i32_79 : i32
    %c8_i32_80 = arith.constant 8 : i32
    %212 = arith.muli %211, %c8_i32_80 : i32
    %213 = arith.addi %212, %c3_i32_75 : i32
    %214 = arith.index_cast %213 : i32 to index
    %215 = memref.load %arg1[%214] : memref<64xi32, #tpu.memory_space<smem>>
    %216 = arith.index_cast %215 : i32 to index
    %c0_81 = arith.constant 0 : index
    %217 = vector.load %arg2[%216, %c0_81] : memref<100x128xf32, #tpu.memory_space<vmem>>, vector<1x128xf32>
    %218 = arith.addf %154, %217 : vector<1x128xf32>
    %c2_i32_82 = arith.constant 2 : i32
    %219 = arith.addi %2, %c2_i32_82 : i32
    %c8_i32_83 = arith.constant 8 : i32
    %220 = arith.muli %219, %c8_i32_83 : i32
    %221 = arith.addi %220, %c3_i32_75 : i32
    %222 = arith.index_cast %221 : i32 to index
    %223 = memref.load %arg1[%222] : memref<64xi32, #tpu.memory_space<smem>>
    %224 = arith.index_cast %223 : i32 to index
    %c0_84 = arith.constant 0 : index
    %225 = vector.load %arg2[%224, %c0_84] : memref<100x128xf32, #tpu.memory_space<vmem>>, vector<1x128xf32>
    %226 = arith.addf %162, %225 : vector<1x128xf32>
    %c3_i32_85 = arith.constant 3 : i32
    %227 = arith.addi %2, %c3_i32_85 : i32
    %c8_i32_86 = arith.constant 8 : i32
    %228 = arith.muli %227, %c8_i32_86 : i32
    %229 = arith.addi %228, %c3_i32_75 : i32
    %230 = arith.index_cast %229 : i32 to index
    %231 = memref.load %arg1[%230] : memref<64xi32, #tpu.memory_space<smem>>
    %232 = arith.index_cast %231 : i32 to index
    %c0_87 = arith.constant 0 : index
    %233 = vector.load %arg2[%232, %c0_87] : memref<100x128xf32, #tpu.memory_space<vmem>>, vector<1x128xf32>
    %234 = arith.addf %170, %233 : vector<1x128xf32>
    %c4_i32_88 = arith.constant 4 : i32
    %235 = arith.addi %2, %c4_i32_88 : i32
    %c8_i32_89 = arith.constant 8 : i32
    %236 = arith.muli %235, %c8_i32_89 : i32
    %237 = arith.addi %236, %c3_i32_75 : i32
    %238 = arith.index_cast %237 : i32 to index
    %239 = memref.load %arg1[%238] : memref<64xi32, #tpu.memory_space<smem>>
    %240 = arith.index_cast %239 : i32 to index
    %c0_90 = arith.constant 0 : index
    %241 = vector.load %arg2[%240, %c0_90] : memref<100x128xf32, #tpu.memory_space<vmem>>, vector<1x128xf32>
    %242 = arith.addf %178, %241 : vector<1x128xf32>
    %c5_i32_91 = arith.constant 5 : i32
    %243 = arith.addi %2, %c5_i32_91 : i32
    %c8_i32_92 = arith.constant 8 : i32
    %244 = arith.muli %243, %c8_i32_92 : i32
    %245 = arith.addi %244, %c3_i32_75 : i32
    %246 = arith.index_cast %245 : i32 to index
    %247 = memref.load %arg1[%246] : memref<64xi32, #tpu.memory_space<smem>>
    %248 = arith.index_cast %247 : i32 to index
    %c0_93 = arith.constant 0 : index
    %249 = vector.load %arg2[%248, %c0_93] : memref<100x128xf32, #tpu.memory_space<vmem>>, vector<1x128xf32>
    %250 = arith.addf %186, %249 : vector<1x128xf32>
    %c6_i32_94 = arith.constant 6 : i32
    %251 = arith.addi %2, %c6_i32_94 : i32
    %c8_i32_95 = arith.constant 8 : i32
    %252 = arith.muli %251, %c8_i32_95 : i32
    %253 = arith.addi %252, %c3_i32_75 : i32
    %254 = arith.index_cast %253 : i32 to index
    %255 = memref.load %arg1[%254] : memref<64xi32, #tpu.memory_space<smem>>
    %256 = arith.index_cast %255 : i32 to index
    %c0_96 = arith.constant 0 : index
    %257 = vector.load %arg2[%256, %c0_96] : memref<100x128xf32, #tpu.memory_space<vmem>>, vector<1x128xf32>
    %258 = arith.addf %194, %257 : vector<1x128xf32>
    %c7_i32_97 = arith.constant 7 : i32
    %259 = arith.addi %2, %c7_i32_97 : i32
    %c8_i32_98 = arith.constant 8 : i32
    %260 = arith.muli %259, %c8_i32_98 : i32
    %261 = arith.addi %260, %c3_i32_75 : i32
    %262 = arith.index_cast %261 : i32 to index
    %263 = memref.load %arg1[%262] : memref<64xi32, #tpu.memory_space<smem>>
    %264 = arith.index_cast %263 : i32 to index
    %c0_99 = arith.constant 0 : index
    %265 = vector.load %arg2[%264, %c0_99] : memref<100x128xf32, #tpu.memory_space<vmem>>, vector<1x128xf32>
    %266 = arith.addf %202, %265 : vector<1x128xf32>
    %c4_i32_100 = arith.constant 4 : i32
    %c0_i32_101 = arith.constant 0 : i32
    %267 = arith.addi %2, %c0_i32_101 : i32
    %c8_i32_102 = arith.constant 8 : i32
    %268 = arith.muli %267, %c8_i32_102 : i32
    %269 = arith.addi %268, %c4_i32_100 : i32
    %270 = arith.index_cast %269 : i32 to index
    %271 = memref.load %arg1[%270] : memref<64xi32, #tpu.memory_space<smem>>
    %272 = arith.index_cast %271 : i32 to index
    %c0_103 = arith.constant 0 : index
    %273 = vector.load %arg2[%272, %c0_103] : memref<100x128xf32, #tpu.memory_space<vmem>>, vector<1x128xf32>
    %274 = arith.addf %210, %273 : vector<1x128xf32>
    %c1_i32_104 = arith.constant 1 : i32
    %275 = arith.addi %2, %c1_i32_104 : i32
    %c8_i32_105 = arith.constant 8 : i32
    %276 = arith.muli %275, %c8_i32_105 : i32
    %277 = arith.addi %276, %c4_i32_100 : i32
    %278 = arith.index_cast %277 : i32 to index
    %279 = memref.load %arg1[%278] : memref<64xi32, #tpu.memory_space<smem>>
    %280 = arith.index_cast %279 : i32 to index
    %c0_106 = arith.constant 0 : index
    %281 = vector.load %arg2[%280, %c0_106] : memref<100x128xf32, #tpu.memory_space<vmem>>, vector<1x128xf32>
    %282 = arith.addf %218, %281 : vector<1x128xf32>
    %c2_i32_107 = arith.constant 2 : i32
    %283 = arith.addi %2, %c2_i32_107 : i32
    %c8_i32_108 = arith.constant 8 : i32
    %284 = arith.muli %283, %c8_i32_108 : i32
    %285 = arith.addi %284, %c4_i32_100 : i32
    %286 = arith.index_cast %285 : i32 to index
    %287 = memref.load %arg1[%286] : memref<64xi32, #tpu.memory_space<smem>>
    %288 = arith.index_cast %287 : i32 to index
    %c0_109 = arith.constant 0 : index
    %289 = vector.load %arg2[%288, %c0_109] : memref<100x128xf32, #tpu.memory_space<vmem>>, vector<1x128xf32>
    %290 = arith.addf %226, %289 : vector<1x128xf32>
    %c3_i32_110 = arith.constant 3 : i32
    %291 = arith.addi %2, %c3_i32_110 : i32
    %c8_i32_111 = arith.constant 8 : i32
    %292 = arith.muli %291, %c8_i32_111 : i32
    %293 = arith.addi %292, %c4_i32_100 : i32
    %294 = arith.index_cast %293 : i32 to index
    %295 = memref.load %arg1[%294] : memref<64xi32, #tpu.memory_space<smem>>
    %296 = arith.index_cast %295 : i32 to index
    %c0_112 = arith.constant 0 : index
    %297 = vector.load %arg2[%296, %c0_112] : memref<100x128xf32, #tpu.memory_space<vmem>>, vector<1x128xf32>
    %298 = arith.addf %234, %297 : vector<1x128xf32>
    %c4_i32_113 = arith.constant 4 : i32
    %299 = arith.addi %2, %c4_i32_113 : i32
    %c8_i32_114 = arith.constant 8 : i32
    %300 = arith.muli %299, %c8_i32_114 : i32
    %301 = arith.addi %300, %c4_i32_100 : i32
    %302 = arith.index_cast %301 : i32 to index
    %303 = memref.load %arg1[%302] : memref<64xi32, #tpu.memory_space<smem>>
    %304 = arith.index_cast %303 : i32 to index
    %c0_115 = arith.constant 0 : index
    %305 = vector.load %arg2[%304, %c0_115] : memref<100x128xf32, #tpu.memory_space<vmem>>, vector<1x128xf32>
    %306 = arith.addf %242, %305 : vector<1x128xf32>
    %c5_i32_116 = arith.constant 5 : i32
    %307 = arith.addi %2, %c5_i32_116 : i32
    %c8_i32_117 = arith.constant 8 : i32
    %308 = arith.muli %307, %c8_i32_117 : i32
    %309 = arith.addi %308, %c4_i32_100 : i32
    %310 = arith.index_cast %309 : i32 to index
    %311 = memref.load %arg1[%310] : memref<64xi32, #tpu.memory_space<smem>>
    %312 = arith.index_cast %311 : i32 to index
    %c0_118 = arith.constant 0 : index
    %313 = vector.load %arg2[%312, %c0_118] : memref<100x128xf32, #tpu.memory_space<vmem>>, vector<1x128xf32>
    %314 = arith.addf %250, %313 : vector<1x128xf32>
    %c6_i32_119 = arith.constant 6 : i32
    %315 = arith.addi %2, %c6_i32_119 : i32
    %c8_i32_120 = arith.constant 8 : i32
    %316 = arith.muli %315, %c8_i32_120 : i32
    %317 = arith.addi %316, %c4_i32_100 : i32
    %318 = arith.index_cast %317 : i32 to index
    %319 = memref.load %arg1[%318] : memref<64xi32, #tpu.memory_space<smem>>
    %320 = arith.index_cast %319 : i32 to index
    %c0_121 = arith.constant 0 : index
    %321 = vector.load %arg2[%320, %c0_121] : memref<100x128xf32, #tpu.memory_space<vmem>>, vector<1x128xf32>
    %322 = arith.addf %258, %321 : vector<1x128xf32>
    %c7_i32_122 = arith.constant 7 : i32
    %323 = arith.addi %2, %c7_i32_122 : i32
    %c8_i32_123 = arith.constant 8 : i32
    %324 = arith.muli %323, %c8_i32_123 : i32
    %325 = arith.addi %324, %c4_i32_100 : i32
    %326 = arith.index_cast %325 : i32 to index
    %327 = memref.load %arg1[%326] : memref<64xi32, #tpu.memory_space<smem>>
    %328 = arith.index_cast %327 : i32 to index
    %c0_124 = arith.constant 0 : index
    %329 = vector.load %arg2[%328, %c0_124] : memref<100x128xf32, #tpu.memory_space<vmem>>, vector<1x128xf32>
    %330 = arith.addf %266, %329 : vector<1x128xf32>
    %c5_i32_125 = arith.constant 5 : i32
    %c0_i32_126 = arith.constant 0 : i32
    %331 = arith.addi %2, %c0_i32_126 : i32
    %c8_i32_127 = arith.constant 8 : i32
    %332 = arith.muli %331, %c8_i32_127 : i32
    %333 = arith.addi %332, %c5_i32_125 : i32
    %334 = arith.index_cast %333 : i32 to index
    %335 = memref.load %arg1[%334] : memref<64xi32, #tpu.memory_space<smem>>
    %336 = arith.index_cast %335 : i32 to index
    %c0_128 = arith.constant 0 : index
    %337 = vector.load %arg2[%336, %c0_128] : memref<100x128xf32, #tpu.memory_space<vmem>>, vector<1x128xf32>
    %338 = arith.addf %274, %337 : vector<1x128xf32>
    %c1_i32_129 = arith.constant 1 : i32
    %339 = arith.addi %2, %c1_i32_129 : i32
    %c8_i32_130 = arith.constant 8 : i32
    %340 = arith.muli %339, %c8_i32_130 : i32
    %341 = arith.addi %340, %c5_i32_125 : i32
    %342 = arith.index_cast %341 : i32 to index
    %343 = memref.load %arg1[%342] : memref<64xi32, #tpu.memory_space<smem>>
    %344 = arith.index_cast %343 : i32 to index
    %c0_131 = arith.constant 0 : index
    %345 = vector.load %arg2[%344, %c0_131] : memref<100x128xf32, #tpu.memory_space<vmem>>, vector<1x128xf32>
    %346 = arith.addf %282, %345 : vector<1x128xf32>
    %c2_i32_132 = arith.constant 2 : i32
    %347 = arith.addi %2, %c2_i32_132 : i32
    %c8_i32_133 = arith.constant 8 : i32
    %348 = arith.muli %347, %c8_i32_133 : i32
    %349 = arith.addi %348, %c5_i32_125 : i32
    %350 = arith.index_cast %349 : i32 to index
    %351 = memref.load %arg1[%350] : memref<64xi32, #tpu.memory_space<smem>>
    %352 = arith.index_cast %351 : i32 to index
    %c0_134 = arith.constant 0 : index
    %353 = vector.load %arg2[%352, %c0_134] : memref<100x128xf32, #tpu.memory_space<vmem>>, vector<1x128xf32>
    %354 = arith.addf %290, %353 : vector<1x128xf32>
    %c3_i32_135 = arith.constant 3 : i32
    %355 = arith.addi %2, %c3_i32_135 : i32
    %c8_i32_136 = arith.constant 8 : i32
    %356 = arith.muli %355, %c8_i32_136 : i32
    %357 = arith.addi %356, %c5_i32_125 : i32
    %358 = arith.index_cast %357 : i32 to index
    %359 = memref.load %arg1[%358] : memref<64xi32, #tpu.memory_space<smem>>
    %360 = arith.index_cast %359 : i32 to index
    %c0_137 = arith.constant 0 : index
    %361 = vector.load %arg2[%360, %c0_137] : memref<100x128xf32, #tpu.memory_space<vmem>>, vector<1x128xf32>
    %362 = arith.addf %298, %361 : vector<1x128xf32>
    %c4_i32_138 = arith.constant 4 : i32
    %363 = arith.addi %2, %c4_i32_138 : i32
    %c8_i32_139 = arith.constant 8 : i32
    %364 = arith.muli %363, %c8_i32_139 : i32
    %365 = arith.addi %364, %c5_i32_125 : i32
    %366 = arith.index_cast %365 : i32 to index
    %367 = memref.load %arg1[%366] : memref<64xi32, #tpu.memory_space<smem>>
    %368 = arith.index_cast %367 : i32 to index
    %c0_140 = arith.constant 0 : index
    %369 = vector.load %arg2[%368, %c0_140] : memref<100x128xf32, #tpu.memory_space<vmem>>, vector<1x128xf32>
    %370 = arith.addf %306, %369 : vector<1x128xf32>
    %c5_i32_141 = arith.constant 5 : i32
    %371 = arith.addi %2, %c5_i32_141 : i32
    %c8_i32_142 = arith.constant 8 : i32
    %372 = arith.muli %371, %c8_i32_142 : i32
    %373 = arith.addi %372, %c5_i32_125 : i32
    %374 = arith.index_cast %373 : i32 to index
    %375 = memref.load %arg1[%374] : memref<64xi32, #tpu.memory_space<smem>>
    %376 = arith.index_cast %375 : i32 to index
    %c0_143 = arith.constant 0 : index
    %377 = vector.load %arg2[%376, %c0_143] : memref<100x128xf32, #tpu.memory_space<vmem>>, vector<1x128xf32>
    %378 = arith.addf %314, %377 : vector<1x128xf32>
    %c6_i32_144 = arith.constant 6 : i32
    %379 = arith.addi %2, %c6_i32_144 : i32
    %c8_i32_145 = arith.constant 8 : i32
    %380 = arith.muli %379, %c8_i32_145 : i32
    %381 = arith.addi %380, %c5_i32_125 : i32
    %382 = arith.index_cast %381 : i32 to index
    %383 = memref.load %arg1[%382] : memref<64xi32, #tpu.memory_space<smem>>
    %384 = arith.index_cast %383 : i32 to index
    %c0_146 = arith.constant 0 : index
    %385 = vector.load %arg2[%384, %c0_146] : memref<100x128xf32, #tpu.memory_space<vmem>>, vector<1x128xf32>
    %386 = arith.addf %322, %385 : vector<1x128xf32>
    %c7_i32_147 = arith.constant 7 : i32
    %387 = arith.addi %2, %c7_i32_147 : i32
    %c8_i32_148 = arith.constant 8 : i32
    %388 = arith.muli %387, %c8_i32_148 : i32
    %389 = arith.addi %388, %c5_i32_125 : i32
    %390 = arith.index_cast %389 : i32 to index
    %391 = memref.load %arg1[%390] : memref<64xi32, #tpu.memory_space<smem>>
    %392 = arith.index_cast %391 : i32 to index
    %c0_149 = arith.constant 0 : index
    %393 = vector.load %arg2[%392, %c0_149] : memref<100x128xf32, #tpu.memory_space<vmem>>, vector<1x128xf32>
    %394 = arith.addf %330, %393 : vector<1x128xf32>
    %c6_i32_150 = arith.constant 6 : i32
    %c0_i32_151 = arith.constant 0 : i32
    %395 = arith.addi %2, %c0_i32_151 : i32
    %c8_i32_152 = arith.constant 8 : i32
    %396 = arith.muli %395, %c8_i32_152 : i32
    %397 = arith.addi %396, %c6_i32_150 : i32
    %398 = arith.index_cast %397 : i32 to index
    %399 = memref.load %arg1[%398] : memref<64xi32, #tpu.memory_space<smem>>
    %400 = arith.index_cast %399 : i32 to index
    %c0_153 = arith.constant 0 : index
    %401 = vector.load %arg2[%400, %c0_153] : memref<100x128xf32, #tpu.memory_space<vmem>>, vector<1x128xf32>
    %402 = arith.addf %338, %401 : vector<1x128xf32>
    %c1_i32_154 = arith.constant 1 : i32
    %403 = arith.addi %2, %c1_i32_154 : i32
    %c8_i32_155 = arith.constant 8 : i32
    %404 = arith.muli %403, %c8_i32_155 : i32
    %405 = arith.addi %404, %c6_i32_150 : i32
    %406 = arith.index_cast %405 : i32 to index
    %407 = memref.load %arg1[%406] : memref<64xi32, #tpu.memory_space<smem>>
    %408 = arith.index_cast %407 : i32 to index
    %c0_156 = arith.constant 0 : index
    %409 = vector.load %arg2[%408, %c0_156] : memref<100x128xf32, #tpu.memory_space<vmem>>, vector<1x128xf32>
    %410 = arith.addf %346, %409 : vector<1x128xf32>
    %c2_i32_157 = arith.constant 2 : i32
    %411 = arith.addi %2, %c2_i32_157 : i32
    %c8_i32_158 = arith.constant 8 : i32
    %412 = arith.muli %411, %c8_i32_158 : i32
    %413 = arith.addi %412, %c6_i32_150 : i32
    %414 = arith.index_cast %413 : i32 to index
    %415 = memref.load %arg1[%414] : memref<64xi32, #tpu.memory_space<smem>>
    %416 = arith.index_cast %415 : i32 to index
    %c0_159 = arith.constant 0 : index
    %417 = vector.load %arg2[%416, %c0_159] : memref<100x128xf32, #tpu.memory_space<vmem>>, vector<1x128xf32>
    %418 = arith.addf %354, %417 : vector<1x128xf32>
    %c3_i32_160 = arith.constant 3 : i32
    %419 = arith.addi %2, %c3_i32_160 : i32
    %c8_i32_161 = arith.constant 8 : i32
    %420 = arith.muli %419, %c8_i32_161 : i32
    %421 = arith.addi %420, %c6_i32_150 : i32
    %422 = arith.index_cast %421 : i32 to index
    %423 = memref.load %arg1[%422] : memref<64xi32, #tpu.memory_space<smem>>
    %424 = arith.index_cast %423 : i32 to index
    %c0_162 = arith.constant 0 : index
    %425 = vector.load %arg2[%424, %c0_162] : memref<100x128xf32, #tpu.memory_space<vmem>>, vector<1x128xf32>
    %426 = arith.addf %362, %425 : vector<1x128xf32>
    %c4_i32_163 = arith.constant 4 : i32
    %427 = arith.addi %2, %c4_i32_163 : i32
    %c8_i32_164 = arith.constant 8 : i32
    %428 = arith.muli %427, %c8_i32_164 : i32
    %429 = arith.addi %428, %c6_i32_150 : i32
    %430 = arith.index_cast %429 : i32 to index
    %431 = memref.load %arg1[%430] : memref<64xi32, #tpu.memory_space<smem>>
    %432 = arith.index_cast %431 : i32 to index
    %c0_165 = arith.constant 0 : index
    %433 = vector.load %arg2[%432, %c0_165] : memref<100x128xf32, #tpu.memory_space<vmem>>, vector<1x128xf32>
    %434 = arith.addf %370, %433 : vector<1x128xf32>
    %c5_i32_166 = arith.constant 5 : i32
    %435 = arith.addi %2, %c5_i32_166 : i32
    %c8_i32_167 = arith.constant 8 : i32
    %436 = arith.muli %435, %c8_i32_167 : i32
    %437 = arith.addi %436, %c6_i32_150 : i32
    %438 = arith.index_cast %437 : i32 to index
    %439 = memref.load %arg1[%438] : memref<64xi32, #tpu.memory_space<smem>>
    %440 = arith.index_cast %439 : i32 to index
    %c0_168 = arith.constant 0 : index
    %441 = vector.load %arg2[%440, %c0_168] : memref<100x128xf32, #tpu.memory_space<vmem>>, vector<1x128xf32>
    %442 = arith.addf %378, %441 : vector<1x128xf32>
    %c6_i32_169 = arith.constant 6 : i32
    %443 = arith.addi %2, %c6_i32_169 : i32
    %c8_i32_170 = arith.constant 8 : i32
    %444 = arith.muli %443, %c8_i32_170 : i32
    %445 = arith.addi %444, %c6_i32_150 : i32
    %446 = arith.index_cast %445 : i32 to index
    %447 = memref.load %arg1[%446] : memref<64xi32, #tpu.memory_space<smem>>
    %448 = arith.index_cast %447 : i32 to index
    %c0_171 = arith.constant 0 : index
    %449 = vector.load %arg2[%448, %c0_171] : memref<100x128xf32, #tpu.memory_space<vmem>>, vector<1x128xf32>
    %450 = arith.addf %386, %449 : vector<1x128xf32>
    %c7_i32_172 = arith.constant 7 : i32
    %451 = arith.addi %2, %c7_i32_172 : i32
    %c8_i32_173 = arith.constant 8 : i32
    %452 = arith.muli %451, %c8_i32_173 : i32
    %453 = arith.addi %452, %c6_i32_150 : i32
    %454 = arith.index_cast %453 : i32 to index
    %455 = memref.load %arg1[%454] : memref<64xi32, #tpu.memory_space<smem>>
    %456 = arith.index_cast %455 : i32 to index
    %c0_174 = arith.constant 0 : index
    %457 = vector.load %arg2[%456, %c0_174] : memref<100x128xf32, #tpu.memory_space<vmem>>, vector<1x128xf32>
    %458 = arith.addf %394, %457 : vector<1x128xf32>
    %c7_i32_175 = arith.constant 7 : i32
    %c0_i32_176 = arith.constant 0 : i32
    %459 = arith.addi %2, %c0_i32_176 : i32
    %c8_i32_177 = arith.constant 8 : i32
    %460 = arith.muli %459, %c8_i32_177 : i32
    %461 = arith.addi %460, %c7_i32_175 : i32
    %462 = arith.index_cast %461 : i32 to index
    %463 = memref.load %arg1[%462] : memref<64xi32, #tpu.memory_space<smem>>
    %464 = arith.index_cast %463 : i32 to index
    %c0_178 = arith.constant 0 : index
    %465 = vector.load %arg2[%464, %c0_178] : memref<100x128xf32, #tpu.memory_space<vmem>>, vector<1x128xf32>
    %466 = arith.addf %402, %465 : vector<1x128xf32>
    %c1_i32_179 = arith.constant 1 : i32
    %467 = arith.addi %2, %c1_i32_179 : i32
    %c8_i32_180 = arith.constant 8 : i32
    %468 = arith.muli %467, %c8_i32_180 : i32
    %469 = arith.addi %468, %c7_i32_175 : i32
    %470 = arith.index_cast %469 : i32 to index
    %471 = memref.load %arg1[%470] : memref<64xi32, #tpu.memory_space<smem>>
    %472 = arith.index_cast %471 : i32 to index
    %c0_181 = arith.constant 0 : index
    %473 = vector.load %arg2[%472, %c0_181] : memref<100x128xf32, #tpu.memory_space<vmem>>, vector<1x128xf32>
    %474 = arith.addf %410, %473 : vector<1x128xf32>
    %c2_i32_182 = arith.constant 2 : i32
    %475 = arith.addi %2, %c2_i32_182 : i32
    %c8_i32_183 = arith.constant 8 : i32
    %476 = arith.muli %475, %c8_i32_183 : i32
    %477 = arith.addi %476, %c7_i32_175 : i32
    %478 = arith.index_cast %477 : i32 to index
    %479 = memref.load %arg1[%478] : memref<64xi32, #tpu.memory_space<smem>>
    %480 = arith.index_cast %479 : i32 to index
    %c0_184 = arith.constant 0 : index
    %481 = vector.load %arg2[%480, %c0_184] : memref<100x128xf32, #tpu.memory_space<vmem>>, vector<1x128xf32>
    %482 = arith.addf %418, %481 : vector<1x128xf32>
    %c3_i32_185 = arith.constant 3 : i32
    %483 = arith.addi %2, %c3_i32_185 : i32
    %c8_i32_186 = arith.constant 8 : i32
    %484 = arith.muli %483, %c8_i32_186 : i32
    %485 = arith.addi %484, %c7_i32_175 : i32
    %486 = arith.index_cast %485 : i32 to index
    %487 = memref.load %arg1[%486] : memref<64xi32, #tpu.memory_space<smem>>
    %488 = arith.index_cast %487 : i32 to index
    %c0_187 = arith.constant 0 : index
    %489 = vector.load %arg2[%488, %c0_187] : memref<100x128xf32, #tpu.memory_space<vmem>>, vector<1x128xf32>
    %490 = arith.addf %426, %489 : vector<1x128xf32>
    %c4_i32_188 = arith.constant 4 : i32
    %491 = arith.addi %2, %c4_i32_188 : i32
    %c8_i32_189 = arith.constant 8 : i32
    %492 = arith.muli %491, %c8_i32_189 : i32
    %493 = arith.addi %492, %c7_i32_175 : i32
    %494 = arith.index_cast %493 : i32 to index
    %495 = memref.load %arg1[%494] : memref<64xi32, #tpu.memory_space<smem>>
    %496 = arith.index_cast %495 : i32 to index
    %c0_190 = arith.constant 0 : index
    %497 = vector.load %arg2[%496, %c0_190] : memref<100x128xf32, #tpu.memory_space<vmem>>, vector<1x128xf32>
    %498 = arith.addf %434, %497 : vector<1x128xf32>
    %c5_i32_191 = arith.constant 5 : i32
    %499 = arith.addi %2, %c5_i32_191 : i32
    %c8_i32_192 = arith.constant 8 : i32
    %500 = arith.muli %499, %c8_i32_192 : i32
    %501 = arith.addi %500, %c7_i32_175 : i32
    %502 = arith.index_cast %501 : i32 to index
    %503 = memref.load %arg1[%502] : memref<64xi32, #tpu.memory_space<smem>>
    %504 = arith.index_cast %503 : i32 to index
    %c0_193 = arith.constant 0 : index
    %505 = vector.load %arg2[%504, %c0_193] : memref<100x128xf32, #tpu.memory_space<vmem>>, vector<1x128xf32>
    %506 = arith.addf %442, %505 : vector<1x128xf32>
    %c6_i32_194 = arith.constant 6 : i32
    %507 = arith.addi %2, %c6_i32_194 : i32
    %c8_i32_195 = arith.constant 8 : i32
    %508 = arith.muli %507, %c8_i32_195 : i32
    %509 = arith.addi %508, %c7_i32_175 : i32
    %510 = arith.index_cast %509 : i32 to index
    %511 = memref.load %arg1[%510] : memref<64xi32, #tpu.memory_space<smem>>
    %512 = arith.index_cast %511 : i32 to index
    %c0_196 = arith.constant 0 : index
    %513 = vector.load %arg2[%512, %c0_196] : memref<100x128xf32, #tpu.memory_space<vmem>>, vector<1x128xf32>
    %514 = arith.addf %450, %513 : vector<1x128xf32>
    %c7_i32_197 = arith.constant 7 : i32
    %515 = arith.addi %2, %c7_i32_197 : i32
    %c8_i32_198 = arith.constant 8 : i32
    %516 = arith.muli %515, %c8_i32_198 : i32
    %517 = arith.addi %516, %c7_i32_175 : i32
    %518 = arith.index_cast %517 : i32 to index
    %519 = memref.load %arg1[%518] : memref<64xi32, #tpu.memory_space<smem>>
    %520 = arith.index_cast %519 : i32 to index
    %c0_199 = arith.constant 0 : index
    %521 = vector.load %arg2[%520, %c0_199] : memref<100x128xf32, #tpu.memory_space<vmem>>, vector<1x128xf32>
    %522 = arith.addf %458, %521 : vector<1x128xf32>
    %c8_i32_200 = arith.constant 8 : i32
    %c8_i32_201 = arith.constant 8 : i32
    %523 = arith.muli %c0_i32, %c8_i32_201 : i32
    %524 = tpu.assume_multiple %523, 8 : i32
    %525 = tpu.concatenate %466, %474, %482, %490, %498, %506, %514, %522 in 0 : vector<1x128xf32>, vector<1x128xf32>, vector<1x128xf32>, vector<1x128xf32>, vector<1x128xf32>, vector<1x128xf32>, vector<1x128xf32>, vector<1x128xf32> -> vector<8x128xf32>
    %526 = arith.index_cast %524 : i32 to index
    %c0_202 = arith.constant 0 : index
    %527 = vector.load %arg6[%526, %c0_202] : memref<8x128xf32, #tpu.memory_space<vmem>>, vector<8x128xf32>
    tpu.vector_store %arg6[%526, %c0_202], %525 {strides = array<i32>} : memref<8x128xf32, #tpu.memory_space<vmem>>, vector<8x128xf32>,
    %c1_i32_203 = arith.constant 1 : i32
    %c0_204 = arith.constant 0 : index
    %c0_205 = arith.constant 0 : index
    %528 = vector.load %arg6[%c0_204, %c0_205] : memref<8x128xf32, #tpu.memory_space<vmem>>, vector<8x128xf32>
    %c0_206 = arith.constant 0 : index
    %c0_207 = arith.constant 0 : index
    %529 = vector.load %arg3[%c0_206, %c0_207] : memref<128x128xf32, #tpu.memory_space<vmem>>, vector<128x128xf32>
    %cst_208 = arith.constant dense<0.000000e+00> : vector<8x128xf32>
    %530 = tpu.matmul %528, %529, %cst_208 {dimension_numbers = #tpu.dot_dimension_numbers<[1], [0], [0], [1], [0, 0, 1, 1], [], []>} : vector<8x128xf32>, vector<128x128xf32>, vector<8x128xf32> -> vector<8x128xf32>
    %c0_209 = arith.constant 0 : index
    %c0_210 = arith.constant 0 : index
    %531 = vector.load %arg4[%c0_209, %c0_210] : memref<1x128xf32, #tpu.memory_space<vmem>>, vector<1x128xf32>
    %532 = vector.broadcast %531 : vector<1x128xf32> to vector<8x128xf32>
    %533 = arith.addf %530, %532 : vector<8x128xf32>
    %c0_211 = arith.constant 0 : index
    %c0_212 = arith.constant 0 : index
    %534 = vector.load %arg5[%c0_211, %c0_212] : memref<8x128xf32, #tpu.memory_space<vmem>>, vector<8x128xf32>
    tpu.vector_store %arg5[%c0_211, %c0_212], %533 {strides = array<i32>} : memref<8x128xf32, #tpu.memory_space<vmem>>, vector<8x128xf32>,
    return
  }
  func.func @transform_0(%arg0: i32, %arg1: memref<64xi32, #tpu.memory_space<smem>>) -> (i32, i32) {
    %c0_i32 = arith.constant 0 : i32
    %c0_i32_0 = arith.constant 0 : i32
    %c0_i32_1 = arith.constant 0 : i32
    return %c0_i32, %c0_i32_0 : i32, i32
  }
  func.func @transform_1(%arg0: i32, %arg1: memref<64xi32, #tpu.memory_space<smem>>) -> (i32, i32) {
    %c0_i32 = arith.constant 0 : i32
    %c0_i32_0 = arith.constant 0 : i32
    %c0_i32_1 = arith.constant 0 : i32
    return %c0_i32, %c0_i32_0 : i32, i32
  }
  func.func @transform_2(%arg0: i32, %arg1: memref<64xi32, #tpu.memory_space<smem>>) -> (i32, i32) {
    %c0_i32 = arith.constant 0 : i32
    %c0_i32_0 = arith.constant 0 : i32
    %c0_i32_1 = arith.constant 0 : i32
    return %c0_i32, %c0_i32_0 : i32, i32
  }
  func.func @transform_3(%arg0: i32, %arg1: memref<64xi32, #tpu.memory_space<smem>>) -> (i32, i32) {
    %c0_i32 = arith.constant 0 : i32
    %c0_i32_0 = arith.constant 0 : i32
    return %arg0, %c0_i32 : i32, i32
  }
}

module attributes {stable_mosaic.version = 11 : i64} {
  func.func @nbow_kernel(%arg0: i32, %arg1: memref<64xi32, #tpu.memory_space<smem>>, %arg2: memref<100x128xf32, #tpu.memory_space<vmem>>, %arg3: memref<128x128xf32, #tpu.memory_space<vmem>>, %arg4: memref<1x128xf32, #tpu.memory_space<vmem>>, %arg5: memref<8x128xf32, #tpu.memory_space<vmem>>, %arg6: memref<8x128xf32, #tpu.memory_space<vmem>>) attributes {dimension_semantics = [#tpu.dimension_semantics<parallel>], iteration_bounds = array<i64: 1>, scalar_prefetch = 1 : i64, scratch_operands = 1 : i64, tpu.core_type = #tpu.core_type<tc>, window_params = [{pipeline_mode = #tpu.pipeline_mode<synchronous>, transform_indices = @transform_0, window_bounds = array<i64: 100, 128>}, {pipeline_mode = #tpu.pipeline_mode<synchronous>, transform_indices = @transform_1, window_bounds = array<i64: 128, 128>}, {pipeline_mode = #tpu.pipeline_mode<synchronous>, transform_indices = @transform_2, window_bounds = array<i64: 1, 128>}, {transform_indices = @transform_3, window_bounds = array<i64: 8, 128>}]} {
    %c8_i32 = arith.constant 8 : i32
    %0 = arith.muli %arg0, %c8_i32 : i32
    %c0_i32 = arith.constant 0 : i32
    %c8_i32_0 = arith.constant 8 : i32
    %1 = arith.muli %c0_i32, %c8_i32_0 : i32
    %2 = arith.addi %0, %1 : i32
    %cst = arith.constant 0.000000e+00 : f32
    %3 = vector.broadcast %cst : f32 to vector<1x128xf32>
    %cst_1 = arith.constant 0.000000e+00 : f32
    %4 = vector.broadcast %cst_1 : f32 to vector<1x128xf32>
    %cst_2 = arith.constant 0.000000e+00 : f32
    %5 = vector.broadcast %cst_2 : f32 to vector<1x128xf32>
    %cst_3 = arith.constant 0.000000e+00 : f32
    %6 = vector.broadcast %cst_3 : f32 to vector<1x128xf32>
    %cst_4 = arith.constant 0.000000e+00 : f32
    %7 = vector.broadcast %cst_4 : f32 to vector<1x128xf32>
    %cst_5 = arith.constant 0.000000e+00 : f32
    %8 = vector.broadcast %cst_5 : f32 to vector<1x128xf32>
    %cst_6 = arith.constant 0.000000e+00 : f32
    %9 = vector.broadcast %cst_6 : f32 to vector<1x128xf32>
    %cst_7 = arith.constant 0.000000e+00 : f32
    %10 = vector.broadcast %cst_7 : f32 to vector<1x128xf32>
    %c0_i32_8 = arith.constant 0 : i32
    %c0_i32_9 = arith.constant 0 : i32
    %11 = arith.addi %2, %c0_i32_9 : i32
    %c8_i32_10 = arith.constant 8 : i32
    %12 = arith.muli %11, %c8_i32_10 : i32
    %13 = arith.addi %12, %c0_i32_8 : i32
    %14 = arith.index_cast %13 : i32 to index
    %15 = memref.load %arg1[%14] : memref<64xi32, #tpu.memory_space<smem>>
    %16 = arith.index_cast %15 : i32 to index
    %c0 = arith.constant 0 : index
    %17 = vector.load %arg2[%16, %c0] : memref<100x128xf32, #tpu.memory_space<vmem>>, vector<1x128xf32>
    %18 = arith.addf %3, %17 : vector<1x128xf32>
    %c1_i32 = arith.constant 1 : i32
    %19 = arith.addi %2, %c1_i32 : i32
    %c8_i32_11 = arith.constant 8 : i32
    %20 = arith.muli %19, %c8_i32_11 : i32
    %21 = arith.addi %20, %c0_i32_8 : i32
    %22 = arith.index_cast %21 : i32 to index
    %23 = memref.load %arg1[%22] : memref<64xi32, #tpu.memory_space<smem>>
    %24 = arith.index_cast %23 : i32 to index
    %c0_12 = arith.constant 0 : index
    %25 = vector.load %arg2[%24, %c0_12] : memref<100x128xf32, #tpu.memory_space<vmem>>, vector<1x128xf32>
    %26 = arith.addf %4, %25 : vector<1x128xf32>
    %c2_i32 = arith.constant 2 : i32
    %27 = arith.addi %2, %c2_i32 : i32
    %c8_i32_13 = arith.constant 8 : i32
    %28 = arith.muli %27, %c8_i32_13 : i32
    %29 = arith.addi %28, %c0_i32_8 : i32
    %30 = arith.index_cast %29 : i32 to index
    %31 = memref.load %arg1[%30] : memref<64xi32, #tpu.memory_space<smem>>
    %32 = arith.index_cast %31 : i32 to index
    %c0_14 = arith.constant 0 : index
    %33 = vector.load %arg2[%32, %c0_14] : memref<100x128xf32, #tpu.memory_space<vmem>>, vector<1x128xf32>
    %34 = arith.addf %5, %33 : vector<1x128xf32>
    %c3_i32 = arith.constant 3 : i32
    %35 = arith.addi %2, %c3_i32 : i32
    %c8_i32_15 = arith.constant 8 : i32
    %36 = arith.muli %35, %c8_i32_15 : i32
    %37 = arith.addi %36, %c0_i32_8 : i32
    %38 = arith.index_cast %37 : i32 to index
    %39 = memref.load %arg1[%38] : memref<64xi32, #tpu.memory_space<smem>>
    %40 = arith.index_cast %39 : i32 to index
    %c0_16 = arith.constant 0 : index
    %41 = vector.load %arg2[%40, %c0_16] : memref<100x128xf32, #tpu.memory_space<vmem>>, vector<1x128xf32>
    %42 = arith.addf %6, %41 : vector<1x128xf32>
    %c4_i32 = arith.constant 4 : i32
    %43 = arith.addi %2, %c4_i32 : i32
    %c8_i32_17 = arith.constant 8 : i32
    %44 = arith.muli %43, %c8_i32_17 : i32
    %45 = arith.addi %44, %c0_i32_8 : i32
    %46 = arith.index_cast %45 : i32 to index
    %47 = memref.load %arg1[%46] : memref<64xi32, #tpu.memory_space<smem>>
    %48 = arith.index_cast %47 : i32 to index
    %c0_18 = arith.constant 0 : index
    %49 = vector.load %arg2[%48, %c0_18] : memref<100x128xf32, #tpu.memory_space<vmem>>, vector<1x128xf32>
    %50 = arith.addf %7, %49 : vector<1x128xf32>
    %c5_i32 = arith.constant 5 : i32
    %51 = arith.addi %2, %c5_i32 : i32
    %c8_i32_19 = arith.constant 8 : i32
    %52 = arith.muli %51, %c8_i32_19 : i32
    %53 = arith.addi %52, %c0_i32_8 : i32
    %54 = arith.index_cast %53 : i32 to index
    %55 = memref.load %arg1[%54] : memref<64xi32, #tpu.memory_space<smem>>
    %56 = arith.index_cast %55 : i32 to index
    %c0_20 = arith.constant 0 : index
    %57 = vector.load %arg2[%56, %c0_20] : memref<100x128xf32, #tpu.memory_space<vmem>>, vector<1x128xf32>
    %58 = arith.addf %8, %57 : vector<1x128xf32>
    %c6_i32 = arith.constant 6 : i32
    %59 = arith.addi %2, %c6_i32 : i32
    %c8_i32_21 = arith.constant 8 : i32
    %60 = arith.muli %59, %c8_i32_21 : i32
    %61 = arith.addi %60, %c0_i32_8 : i32
    %62 = arith.index_cast %61 : i32 to index
    %63 = memref.load %arg1[%62] : memref<64xi32, #tpu.memory_space<smem>>
    %64 = arith.index_cast %63 : i32 to index
    %c0_22 = arith.constant 0 : index
    %65 = vector.load %arg2[%64, %c0_22] : memref<100x128xf32, #tpu.memory_space<vmem>>, vector<1x128xf32>
    %66 = arith.addf %9, %65 : vector<1x128xf32>
    %c7_i32 = arith.constant 7 : i32
    %67 = arith.addi %2, %c7_i32 : i32
    %c8_i32_23 = arith.constant 8 : i32
    %68 = arith.muli %67, %c8_i32_23 : i32
    %69 = arith.addi %68, %c0_i32_8 : i32
    %70 = arith.index_cast %69 : i32 to index
    %71 = memref.load %arg1[%70] : memref<64xi32, #tpu.memory_space<smem>>
    %72 = arith.index_cast %71 : i32 to index
    %c0_24 = arith.constant 0 : index
    %73 = vector.load %arg2[%72, %c0_24] : memref<100x128xf32, #tpu.memory_space<vmem>>, vector<1x128xf32>
    %74 = arith.addf %10, %73 : vector<1x128xf32>
    %c1_i32_25 = arith.constant 1 : i32
    %c0_i32_26 = arith.constant 0 : i32
    %75 = arith.addi %2, %c0_i32_26 : i32
    %c8_i32_27 = arith.constant 8 : i32
    %76 = arith.muli %75, %c8_i32_27 : i32
    %77 = arith.addi %76, %c1_i32_25 : i32
    %78 = arith.index_cast %77 : i32 to index
    %79 = memref.load %arg1[%78] : memref<64xi32, #tpu.memory_space<smem>>
    %80 = arith.index_cast %79 : i32 to index
    %c0_28 = arith.constant 0 : index
    %81 = vector.load %arg2[%80, %c0_28] : memref<100x128xf32, #tpu.memory_space<vmem>>, vector<1x128xf32>
    %82 = arith.addf %18, %81 : vector<1x128xf32>
    %c1_i32_29 = arith.constant 1 : i32
    %83 = arith.addi %2, %c1_i32_29 : i32
    %c8_i32_30 = arith.constant 8 : i32
    %84 = arith.muli %83, %c8_i32_30 : i32
    %85 = arith.addi %84, %c1_i32_25 : i32
    %86 = arith.index_cast %85 : i32 to index
    %87 = memref.load %arg1[%86] : memref<64xi32, #tpu.memory_space<smem>>
    %88 = arith.index_cast %87 : i32 to index
    %c0_31 = arith.constant 0 : index
    %89 = vector.load %arg2[%88, %c0_31] : memref<100x128xf32, #tpu.memory_space<vmem>>, vector<1x128xf32>
    %90 = arith.addf %26, %89 : vector<1x128xf32>
    %c2_i32_32 = arith.constant 2 : i32
    %91 = arith.addi %2, %c2_i32_32 : i32
    %c8_i32_33 = arith.constant 8 : i32
    %92 = arith.muli %91, %c8_i32_33 : i32
    %93 = arith.addi %92, %c1_i32_25 : i32
    %94 = arith.index_cast %93 : i32 to index
    %95 = memref.load %arg1[%94] : memref<64xi32, #tpu.memory_space<smem>>
    %96 = arith.index_cast %95 : i32 to index
    %c0_34 = arith.constant 0 : index
    %97 = vector.load %arg2[%96, %c0_34] : memref<100x128xf32, #tpu.memory_space<vmem>>, vector<1x128xf32>
    %98 = arith.addf %34, %97 : vector<1x128xf32>
    %c3_i32_35 = arith.constant 3 : i32
    %99 = arith.addi %2, %c3_i32_35 : i32
    %c8_i32_36 = arith.constant 8 : i32
    %100 = arith.muli %99, %c8_i32_36 : i32
    %101 = arith.addi %100, %c1_i32_25 : i32
    %102 = arith.index_cast %101 : i32 to index
    %103 = memref.load %arg1[%102] : memref<64xi32, #tpu.memory_space<smem>>
    %104 = arith.index_cast %103 : i32 to index
    %c0_37 = arith.constant 0 : index
    %105 = vector.load %arg2[%104, %c0_37] : memref<100x128xf32, #tpu.memory_space<vmem>>, vector<1x128xf32>
    %106 = arith.addf %42, %105 : vector<1x128xf32>
    %c4_i32_38 = arith.constant 4 : i32
    %107 = arith.addi %2, %c4_i32_38 : i32
    %c8_i32_39 = arith.constant 8 : i32
    %108 = arith.muli %107, %c8_i32_39 : i32
    %109 = arith.addi %108, %c1_i32_25 : i32
    %110 = arith.index_cast %109 : i32 to index
    %111 = memref.load %arg1[%110] : memref<64xi32, #tpu.memory_space<smem>>
    %112 = arith.index_cast %111 : i32 to index
    %c0_40 = arith.constant 0 : index
    %113 = vector.load %arg2[%112, %c0_40] : memref<100x128xf32, #tpu.memory_space<vmem>>, vector<1x128xf32>
    %114 = arith.addf %50, %113 : vector<1x128xf32>
    %c5_i32_41 = arith.constant 5 : i32
    %115 = arith.addi %2, %c5_i32_41 : i32
    %c8_i32_42 = arith.constant 8 : i32
    %116 = arith.muli %115, %c8_i32_42 : i32
    %117 = arith.addi %116, %c1_i32_25 : i32
    %118 = arith.index_cast %117 : i32 to index
    %119 = memref.load %arg1[%118] : memref<64xi32, #tpu.memory_space<smem>>
    %120 = arith.index_cast %119 : i32 to index
    %c0_43 = arith.constant 0 : index
    %121 = vector.load %arg2[%120, %c0_43] : memref<100x128xf32, #tpu.memory_space<vmem>>, vector<1x128xf32>
    %122 = arith.addf %58, %121 : vector<1x128xf32>
    %c6_i32_44 = arith.constant 6 : i32
    %123 = arith.addi %2, %c6_i32_44 : i32
    %c8_i32_45 = arith.constant 8 : i32
    %124 = arith.muli %123, %c8_i32_45 : i32
    %125 = arith.addi %124, %c1_i32_25 : i32
    %126 = arith.index_cast %125 : i32 to index
    %127 = memref.load %arg1[%126] : memref<64xi32, #tpu.memory_space<smem>>
    %128 = arith.index_cast %127 : i32 to index
    %c0_46 = arith.constant 0 : index
    %129 = vector.load %arg2[%128, %c0_46] : memref<100x128xf32, #tpu.memory_space<vmem>>, vector<1x128xf32>
    %130 = arith.addf %66, %129 : vector<1x128xf32>
    %c7_i32_47 = arith.constant 7 : i32
    %131 = arith.addi %2, %c7_i32_47 : i32
    %c8_i32_48 = arith.constant 8 : i32
    %132 = arith.muli %131, %c8_i32_48 : i32
    %133 = arith.addi %132, %c1_i32_25 : i32
    %134 = arith.index_cast %133 : i32 to index
    %135 = memref.load %arg1[%134] : memref<64xi32, #tpu.memory_space<smem>>
    %136 = arith.index_cast %135 : i32 to index
    %c0_49 = arith.constant 0 : index
    %137 = vector.load %arg2[%136, %c0_49] : memref<100x128xf32, #tpu.memory_space<vmem>>, vector<1x128xf32>
    %138 = arith.addf %74, %137 : vector<1x128xf32>
    %c2_i32_50 = arith.constant 2 : i32
    %c0_i32_51 = arith.constant 0 : i32
    %139 = arith.addi %2, %c0_i32_51 : i32
    %c8_i32_52 = arith.constant 8 : i32
    %140 = arith.muli %139, %c8_i32_52 : i32
    %141 = arith.addi %140, %c2_i32_50 : i32
    %142 = arith.index_cast %141 : i32 to index
    %143 = memref.load %arg1[%142] : memref<64xi32, #tpu.memory_space<smem>>
    %144 = arith.index_cast %143 : i32 to index
    %c0_53 = arith.constant 0 : index
    %145 = vector.load %arg2[%144, %c0_53] : memref<100x128xf32, #tpu.memory_space<vmem>>, vector<1x128xf32>
    %146 = arith.addf %82, %145 : vector<1x128xf32>
    %c1_i32_54 = arith.constant 1 : i32
    %147 = arith.addi %2, %c1_i32_54 : i32
    %c8_i32_55 = arith.constant 8 : i32
    %148 = arith.muli %147, %c8_i32_55 : i32
    %149 = arith.addi %148, %c2_i32_50 : i32
    %150 = arith.index_cast %149 : i32 to index
    %151 = memref.load %arg1[%150] : memref<64xi32, #tpu.memory_space<smem>>
    %152 = arith.index_cast %151 : i32 to index
    %c0_56 = arith.constant 0 : index
    %153 = vector.load %arg2[%152, %c0_56] : memref<100x128xf32, #tpu.memory_space<vmem>>, vector<1x128xf32>
    %154 = arith.addf %90, %153 : vector<1x128xf32>
    %c2_i32_57 = arith.constant 2 : i32
    %155 = arith.addi %2, %c2_i32_57 : i32
    %c8_i32_58 = arith.constant 8 : i32
    %156 = arith.muli %155, %c8_i32_58 : i32
    %157 = arith.addi %156, %c2_i32_50 : i32
    %158 = arith.index_cast %157 : i32 to index
    %159 = memref.load %arg1[%158] : memref<64xi32, #tpu.memory_space<smem>>
    %160 = arith.index_cast %159 : i32 to index
    %c0_59 = arith.constant 0 : index
    %161 = vector.load %arg2[%160, %c0_59] : memref<100x128xf32, #tpu.memory_space<vmem>>, vector<1x128xf32>
    %162 = arith.addf %98, %161 : vector<1x128xf32>
    %c3_i32_60 = arith.constant 3 : i32
    %163 = arith.addi %2, %c3_i32_60 : i32
    %c8_i32_61 = arith.constant 8 : i32
    %164 = arith.muli %163, %c8_i32_61 : i32
    %165 = arith.addi %164, %c2_i32_50 : i32
    %166 = arith.index_cast %165 : i32 to index
    %167 = memref.load %arg1[%166] : memref<64xi32, #tpu.memory_space<smem>>
    %168 = arith.index_cast %167 : i32 to index
    %c0_62 = arith.constant 0 : index
    %169 = vector.load %arg2[%168, %c0_62] : memref<100x128xf32, #tpu.memory_space<vmem>>, vector<1x128xf32>
    %170 = arith.addf %106, %169 : vector<1x128xf32>
    %c4_i32_63 = arith.constant 4 : i32
    %171 = arith.addi %2, %c4_i32_63 : i32
    %c8_i32_64 = arith.constant 8 : i32
    %172 = arith.muli %171, %c8_i32_64 : i32
    %173 = arith.addi %172, %c2_i32_50 : i32
    %174 = arith.index_cast %173 : i32 to index
    %175 = memref.load %arg1[%174] : memref<64xi32, #tpu.memory_space<smem>>
    %176 = arith.index_cast %175 : i32 to index
    %c0_65 = arith.constant 0 : index
    %177 = vector.load %arg2[%176, %c0_65] : memref<100x128xf32, #tpu.memory_space<vmem>>, vector<1x128xf32>
    %178 = arith.addf %114, %177 : vector<1x128xf32>
    %c5_i32_66 = arith.constant 5 : i32
    %179 = arith.addi %2, %c5_i32_66 : i32
    %c8_i32_67 = arith.constant 8 : i32
    %180 = arith.muli %179, %c8_i32_67 : i32
    %181 = arith.addi %180, %c2_i32_50 : i32
    %182 = arith.index_cast %181 : i32 to index
    %183 = memref.load %arg1[%182] : memref<64xi32, #tpu.memory_space<smem>>
    %184 = arith.index_cast %183 : i32 to index
    %c0_68 = arith.constant 0 : index
    %185 = vector.load %arg2[%184, %c0_68] : memref<100x128xf32, #tpu.memory_space<vmem>>, vector<1x128xf32>
    %186 = arith.addf %122, %185 : vector<1x128xf32>
    %c6_i32_69 = arith.constant 6 : i32
    %187 = arith.addi %2, %c6_i32_69 : i32
    %c8_i32_70 = arith.constant 8 : i32
    %188 = arith.muli %187, %c8_i32_70 : i32
    %189 = arith.addi %188, %c2_i32_50 : i32
    %190 = arith.index_cast %189 : i32 to index
    %191 = memref.load %arg1[%190] : memref<64xi32, #tpu.memory_space<smem>>
    %192 = arith.index_cast %191 : i32 to index
    %c0_71 = arith.constant 0 : index
    %193 = vector.load %arg2[%192, %c0_71] : memref<100x128xf32, #tpu.memory_space<vmem>>, vector<1x128xf32>
    %194 = arith.addf %130, %193 : vector<1x128xf32>
    %c7_i32_72 = arith.constant 7 : i32
    %195 = arith.addi %2, %c7_i32_72 : i32
    %c8_i32_73 = arith.constant 8 : i32
    %196 = arith.muli %195, %c8_i32_73 : i32
    %197 = arith.addi %196, %c2_i32_50 : i32
    %198 = arith.index_cast %197 : i32 to index
    %199 = memref.load %arg1[%198] : memref<64xi32, #tpu.memory_space<smem>>
    %200 = arith.index_cast %199 : i32 to index
    %c0_74 = arith.constant 0 : index
    %201 = vector.load %arg2[%200, %c0_74] : memref<100x128xf32, #tpu.memory_space<vmem>>, vector<1x128xf32>
    %202 = arith.addf %138, %201 : vector<1x128xf32>
    %c3_i32_75 = arith.constant 3 : i32
    %c0_i32_76 = arith.constant 0 : i32
    %203 = arith.addi %2, %c0_i32_76 : i32
    %c8_i32_77 = arith.constant 8 : i32
    %204 = arith.muli %203, %c8_i32_77 : i32
    %205 = arith.addi %204, %c3_i32_75 : i32
    %206 = arith.index_cast %205 : i32 to index
    %207 = memref.load %arg1[%206] : memref<64xi32, #tpu.memory_space<smem>>
    %208 = arith.index_cast %207 : i32 to index
    %c0_78 = arith.constant 0 : index
    %209 = vector.load %arg2[%208, %c0_78] : memref<100x128xf32, #tpu.memory_space<vmem>>, vector<1x128xf32>
    %210 = arith.addf %146, %209 : vector<1x128xf32>
    %c1_i32_79 = arith.constant 1 : i32
    %211 = arith.addi %2, %c1_i32_79 : i32
    %c8_i32_80 = arith.constant 8 : i32
    %212 = arith.muli %211, %c8_i32_80 : i32
    %213 = arith.addi %212, %c3_i32_75 : i32
    %214 = arith.index_cast %213 : i32 to index
    %215 = memref.load %arg1[%214] : memref<64xi32, #tpu.memory_space<smem>>
    %216 = arith.index_cast %215 : i32 to index
    %c0_81 = arith.constant 0 : index
    %217 = vector.load %arg2[%216, %c0_81] : memref<100x128xf32, #tpu.memory_space<vmem>>, vector<1x128xf32>
    %218 = arith.addf %154, %217 : vector<1x128xf32>
    %c2_i32_82 = arith.constant 2 : i32
    %219 = arith.addi %2, %c2_i32_82 : i32
    %c8_i32_83 = arith.constant 8 : i32
    %220 = arith.muli %219, %c8_i32_83 : i32
    %221 = arith.addi %220, %c3_i32_75 : i32
    %222 = arith.index_cast %221 : i32 to index
    %223 = memref.load %arg1[%222] : memref<64xi32, #tpu.memory_space<smem>>
    %224 = arith.index_cast %223 : i32 to index
    %c0_84 = arith.constant 0 : index
    %225 = vector.load %arg2[%224, %c0_84] : memref<100x128xf32, #tpu.memory_space<vmem>>, vector<1x128xf32>
    %226 = arith.addf %162, %225 : vector<1x128xf32>
    %c3_i32_85 = arith.constant 3 : i32
    %227 = arith.addi %2, %c3_i32_85 : i32
    %c8_i32_86 = arith.constant 8 : i32
    %228 = arith.muli %227, %c8_i32_86 : i32
    %229 = arith.addi %228, %c3_i32_75 : i32
    %230 = arith.index_cast %229 : i32 to index
    %231 = memref.load %arg1[%230] : memref<64xi32, #tpu.memory_space<smem>>
    %232 = arith.index_cast %231 : i32 to index
    %c0_87 = arith.constant 0 : index
    %233 = vector.load %arg2[%232, %c0_87] : memref<100x128xf32, #tpu.memory_space<vmem>>, vector<1x128xf32>
    %234 = arith.addf %170, %233 : vector<1x128xf32>
    %c4_i32_88 = arith.constant 4 : i32
    %235 = arith.addi %2, %c4_i32_88 : i32
    %c8_i32_89 = arith.constant 8 : i32
    %236 = arith.muli %235, %c8_i32_89 : i32
    %237 = arith.addi %236, %c3_i32_75 : i32
    %238 = arith.index_cast %237 : i32 to index
    %239 = memref.load %arg1[%238] : memref<64xi32, #tpu.memory_space<smem>>
    %240 = arith.index_cast %239 : i32 to index
    %c0_90 = arith.constant 0 : index
    %241 = vector.load %arg2[%240, %c0_90] : memref<100x128xf32, #tpu.memory_space<vmem>>, vector<1x128xf32>
    %242 = arith.addf %178, %241 : vector<1x128xf32>
    %c5_i32_91 = arith.constant 5 : i32
    %243 = arith.addi %2, %c5_i32_91 : i32
    %c8_i32_92 = arith.constant 8 : i32
    %244 = arith.muli %243, %c8_i32_92 : i32
    %245 = arith.addi %244, %c3_i32_75 : i32
    %246 = arith.index_cast %245 : i32 to index
    %247 = memref.load %arg1[%246] : memref<64xi32, #tpu.memory_space<smem>>
    %248 = arith.index_cast %247 : i32 to index
    %c0_93 = arith.constant 0 : index
    %249 = vector.load %arg2[%248, %c0_93] : memref<100x128xf32, #tpu.memory_space<vmem>>, vector<1x128xf32>
    %250 = arith.addf %186, %249 : vector<1x128xf32>
    %c6_i32_94 = arith.constant 6 : i32
    %251 = arith.addi %2, %c6_i32_94 : i32
    %c8_i32_95 = arith.constant 8 : i32
    %252 = arith.muli %251, %c8_i32_95 : i32
    %253 = arith.addi %252, %c3_i32_75 : i32
    %254 = arith.index_cast %253 : i32 to index
    %255 = memref.load %arg1[%254] : memref<64xi32, #tpu.memory_space<smem>>
    %256 = arith.index_cast %255 : i32 to index
    %c0_96 = arith.constant 0 : index
    %257 = vector.load %arg2[%256, %c0_96] : memref<100x128xf32, #tpu.memory_space<vmem>>, vector<1x128xf32>
    %258 = arith.addf %194, %257 : vector<1x128xf32>
    %c7_i32_97 = arith.constant 7 : i32
    %259 = arith.addi %2, %c7_i32_97 : i32
    %c8_i32_98 = arith.constant 8 : i32
    %260 = arith.muli %259, %c8_i32_98 : i32
    %261 = arith.addi %260, %c3_i32_75 : i32
    %262 = arith.index_cast %261 : i32 to index
    %263 = memref.load %arg1[%262] : memref<64xi32, #tpu.memory_space<smem>>
    %264 = arith.index_cast %263 : i32 to index
    %c0_99 = arith.constant 0 : index
    %265 = vector.load %arg2[%264, %c0_99] : memref<100x128xf32, #tpu.memory_space<vmem>>, vector<1x128xf32>
    %266 = arith.addf %202, %265 : vector<1x128xf32>
    %c4_i32_100 = arith.constant 4 : i32
    %c0_i32_101 = arith.constant 0 : i32
    %267 = arith.addi %2, %c0_i32_101 : i32
    %c8_i32_102 = arith.constant 8 : i32
    %268 = arith.muli %267, %c8_i32_102 : i32
    %269 = arith.addi %268, %c4_i32_100 : i32
    %270 = arith.index_cast %269 : i32 to index
    %271 = memref.load %arg1[%270] : memref<64xi32, #tpu.memory_space<smem>>
    %272 = arith.index_cast %271 : i32 to index
    %c0_103 = arith.constant 0 : index
    %273 = vector.load %arg2[%272, %c0_103] : memref<100x128xf32, #tpu.memory_space<vmem>>, vector<1x128xf32>
    %274 = arith.addf %210, %273 : vector<1x128xf32>
    %c1_i32_104 = arith.constant 1 : i32
    %275 = arith.addi %2, %c1_i32_104 : i32
    %c8_i32_105 = arith.constant 8 : i32
    %276 = arith.muli %275, %c8_i32_105 : i32
    %277 = arith.addi %276, %c4_i32_100 : i32
    %278 = arith.index_cast %277 : i32 to index
    %279 = memref.load %arg1[%278] : memref<64xi32, #tpu.memory_space<smem>>
    %280 = arith.index_cast %279 : i32 to index
    %c0_106 = arith.constant 0 : index
    %281 = vector.load %arg2[%280, %c0_106] : memref<100x128xf32, #tpu.memory_space<vmem>>, vector<1x128xf32>
    %282 = arith.addf %218, %281 : vector<1x128xf32>
    %c2_i32_107 = arith.constant 2 : i32
    %283 = arith.addi %2, %c2_i32_107 : i32
    %c8_i32_108 = arith.constant 8 : i32
    %284 = arith.muli %283, %c8_i32_108 : i32
    %285 = arith.addi %284, %c4_i32_100 : i32
    %286 = arith.index_cast %285 : i32 to index
    %287 = memref.load %arg1[%286] : memref<64xi32, #tpu.memory_space<smem>>
    %288 = arith.index_cast %287 : i32 to index
    %c0_109 = arith.constant 0 : index
    %289 = vector.load %arg2[%288, %c0_109] : memref<100x128xf32, #tpu.memory_space<vmem>>, vector<1x128xf32>
    %290 = arith.addf %226, %289 : vector<1x128xf32>
    %c3_i32_110 = arith.constant 3 : i32
    %291 = arith.addi %2, %c3_i32_110 : i32
    %c8_i32_111 = arith.constant 8 : i32
    %292 = arith.muli %291, %c8_i32_111 : i32
    %293 = arith.addi %292, %c4_i32_100 : i32
    %294 = arith.index_cast %293 : i32 to index
    %295 = memref.load %arg1[%294] : memref<64xi32, #tpu.memory_space<smem>>
    %296 = arith.index_cast %295 : i32 to index
    %c0_112 = arith.constant 0 : index
    %297 = vector.load %arg2[%296, %c0_112] : memref<100x128xf32, #tpu.memory_space<vmem>>, vector<1x128xf32>
    %298 = arith.addf %234, %297 : vector<1x128xf32>
    %c4_i32_113 = arith.constant 4 : i32
    %299 = arith.addi %2, %c4_i32_113 : i32
    %c8_i32_114 = arith.constant 8 : i32
    %300 = arith.muli %299, %c8_i32_114 : i32
    %301 = arith.addi %300, %c4_i32_100 : i32
    %302 = arith.index_cast %301 : i32 to index
    %303 = memref.load %arg1[%302] : memref<64xi32, #tpu.memory_space<smem>>
    %304 = arith.index_cast %303 : i32 to index
    %c0_115 = arith.constant 0 : index
    %305 = vector.load %arg2[%304, %c0_115] : memref<100x128xf32, #tpu.memory_space<vmem>>, vector<1x128xf32>
    %306 = arith.addf %242, %305 : vector<1x128xf32>
    %c5_i32_116 = arith.constant 5 : i32
    %307 = arith.addi %2, %c5_i32_116 : i32
    %c8_i32_117 = arith.constant 8 : i32
    %308 = arith.muli %307, %c8_i32_117 : i32
    %309 = arith.addi %308, %c4_i32_100 : i32
    %310 = arith.index_cast %309 : i32 to index
    %311 = memref.load %arg1[%310] : memref<64xi32, #tpu.memory_space<smem>>
    %312 = arith.index_cast %311 : i32 to index
    %c0_118 = arith.constant 0 : index
    %313 = vector.load %arg2[%312, %c0_118] : memref<100x128xf32, #tpu.memory_space<vmem>>, vector<1x128xf32>
    %314 = arith.addf %250, %313 : vector<1x128xf32>
    %c6_i32_119 = arith.constant 6 : i32
    %315 = arith.addi %2, %c6_i32_119 : i32
    %c8_i32_120 = arith.constant 8 : i32
    %316 = arith.muli %315, %c8_i32_120 : i32
    %317 = arith.addi %316, %c4_i32_100 : i32
    %318 = arith.index_cast %317 : i32 to index
    %319 = memref.load %arg1[%318] : memref<64xi32, #tpu.memory_space<smem>>
    %320 = arith.index_cast %319 : i32 to index
    %c0_121 = arith.constant 0 : index
    %321 = vector.load %arg2[%320, %c0_121] : memref<100x128xf32, #tpu.memory_space<vmem>>, vector<1x128xf32>
    %322 = arith.addf %258, %321 : vector<1x128xf32>
    %c7_i32_122 = arith.constant 7 : i32
    %323 = arith.addi %2, %c7_i32_122 : i32
    %c8_i32_123 = arith.constant 8 : i32
    %324 = arith.muli %323, %c8_i32_123 : i32
    %325 = arith.addi %324, %c4_i32_100 : i32
    %326 = arith.index_cast %325 : i32 to index
    %327 = memref.load %arg1[%326] : memref<64xi32, #tpu.memory_space<smem>>
    %328 = arith.index_cast %327 : i32 to index
    %c0_124 = arith.constant 0 : index
    %329 = vector.load %arg2[%328, %c0_124] : memref<100x128xf32, #tpu.memory_space<vmem>>, vector<1x128xf32>
    %330 = arith.addf %266, %329 : vector<1x128xf32>
    %c5_i32_125 = arith.constant 5 : i32
    %c0_i32_126 = arith.constant 0 : i32
    %331 = arith.addi %2, %c0_i32_126 : i32
    %c8_i32_127 = arith.constant 8 : i32
    %332 = arith.muli %331, %c8_i32_127 : i32
    %333 = arith.addi %332, %c5_i32_125 : i32
    %334 = arith.index_cast %333 : i32 to index
    %335 = memref.load %arg1[%334] : memref<64xi32, #tpu.memory_space<smem>>
    %336 = arith.index_cast %335 : i32 to index
    %c0_128 = arith.constant 0 : index
    %337 = vector.load %arg2[%336, %c0_128] : memref<100x128xf32, #tpu.memory_space<vmem>>, vector<1x128xf32>
    %338 = arith.addf %274, %337 : vector<1x128xf32>
    %c1_i32_129 = arith.constant 1 : i32
    %339 = arith.addi %2, %c1_i32_129 : i32
    %c8_i32_130 = arith.constant 8 : i32
    %340 = arith.muli %339, %c8_i32_130 : i32
    %341 = arith.addi %340, %c5_i32_125 : i32
    %342 = arith.index_cast %341 : i32 to index
    %343 = memref.load %arg1[%342] : memref<64xi32, #tpu.memory_space<smem>>
    %344 = arith.index_cast %343 : i32 to index
    %c0_131 = arith.constant 0 : index
    %345 = vector.load %arg2[%344, %c0_131] : memref<100x128xf32, #tpu.memory_space<vmem>>, vector<1x128xf32>
    %346 = arith.addf %282, %345 : vector<1x128xf32>
    %c2_i32_132 = arith.constant 2 : i32
    %347 = arith.addi %2, %c2_i32_132 : i32
    %c8_i32_133 = arith.constant 8 : i32
    %348 = arith.muli %347, %c8_i32_133 : i32
    %349 = arith.addi %348, %c5_i32_125 : i32
    %350 = arith.index_cast %349 : i32 to index
    %351 = memref.load %arg1[%350] : memref<64xi32, #tpu.memory_space<smem>>
    %352 = arith.index_cast %351 : i32 to index
    %c0_134 = arith.constant 0 : index
    %353 = vector.load %arg2[%352, %c0_134] : memref<100x128xf32, #tpu.memory_space<vmem>>, vector<1x128xf32>
    %354 = arith.addf %290, %353 : vector<1x128xf32>
    %c3_i32_135 = arith.constant 3 : i32
    %355 = arith.addi %2, %c3_i32_135 : i32
    %c8_i32_136 = arith.constant 8 : i32
    %356 = arith.muli %355, %c8_i32_136 : i32
    %357 = arith.addi %356, %c5_i32_125 : i32
    %358 = arith.index_cast %357 : i32 to index
    %359 = memref.load %arg1[%358] : memref<64xi32, #tpu.memory_space<smem>>
    %360 = arith.index_cast %359 : i32 to index
    %c0_137 = arith.constant 0 : index
    %361 = vector.load %arg2[%360, %c0_137] : memref<100x128xf32, #tpu.memory_space<vmem>>, vector<1x128xf32>
    %362 = arith.addf %298, %361 : vector<1x128xf32>
    %c4_i32_138 = arith.constant 4 : i32
    %363 = arith.addi %2, %c4_i32_138 : i32
    %c8_i32_139 = arith.constant 8 : i32
    %364 = arith.muli %363, %c8_i32_139 : i32
    %365 = arith.addi %364, %c5_i32_125 : i32
    %366 = arith.index_cast %365 : i32 to index
    %367 = memref.load %arg1[%366] : memref<64xi32, #tpu.memory_space<smem>>
    %368 = arith.index_cast %367 : i32 to index
    %c0_140 = arith.constant 0 : index
    %369 = vector.load %arg2[%368, %c0_140] : memref<100x128xf32, #tpu.memory_space<vmem>>, vector<1x128xf32>
    %370 = arith.addf %306, %369 : vector<1x128xf32>
    %c5_i32_141 = arith.constant 5 : i32
    %371 = arith.addi %2, %c5_i32_141 : i32
    %c8_i32_142 = arith.constant 8 : i32
    %372 = arith.muli %371, %c8_i32_142 : i32
    %373 = arith.addi %372, %c5_i32_125 : i32
    %374 = arith.index_cast %373 : i32 to index
    %375 = memref.load %arg1[%374] : memref<64xi32, #tpu.memory_space<smem>>
    %376 = arith.index_cast %375 : i32 to index
    %c0_143 = arith.constant 0 : index
    %377 = vector.load %arg2[%376, %c0_143] : memref<100x128xf32, #tpu.memory_space<vmem>>, vector<1x128xf32>
    %378 = arith.addf %314, %377 : vector<1x128xf32>
    %c6_i32_144 = arith.constant 6 : i32
    %379 = arith.addi %2, %c6_i32_144 : i32
    %c8_i32_145 = arith.constant 8 : i32
    %380 = arith.muli %379, %c8_i32_145 : i32
    %381 = arith.addi %380, %c5_i32_125 : i32
    %382 = arith.index_cast %381 : i32 to index
    %383 = memref.load %arg1[%382] : memref<64xi32, #tpu.memory_space<smem>>
    %384 = arith.index_cast %383 : i32 to index
    %c0_146 = arith.constant 0 : index
    %385 = vector.load %arg2[%384, %c0_146] : memref<100x128xf32, #tpu.memory_space<vmem>>, vector<1x128xf32>
    %386 = arith.addf %322, %385 : vector<1x128xf32>
    %c7_i32_147 = arith.constant 7 : i32
    %387 = arith.addi %2, %c7_i32_147 : i32
    %c8_i32_148 = arith.constant 8 : i32
    %388 = arith.muli %387, %c8_i32_148 : i32
    %389 = arith.addi %388, %c5_i32_125 : i32
    %390 = arith.index_cast %389 : i32 to index
    %391 = memref.load %arg1[%390] : memref<64xi32, #tpu.memory_space<smem>>
    %392 = arith.index_cast %391 : i32 to index
    %c0_149 = arith.constant 0 : index
    %393 = vector.load %arg2[%392, %c0_149] : memref<100x128xf32, #tpu.memory_space<vmem>>, vector<1x128xf32>
    %394 = arith.addf %330, %393 : vector<1x128xf32>
    %c6_i32_150 = arith.constant 6 : i32
    %c0_i32_151 = arith.constant 0 : i32
    %395 = arith.addi %2, %c0_i32_151 : i32
    %c8_i32_152 = arith.constant 8 : i32
    %396 = arith.muli %395, %c8_i32_152 : i32
    %397 = arith.addi %396, %c6_i32_150 : i32
    %398 = arith.index_cast %397 : i32 to index
    %399 = memref.load %arg1[%398] : memref<64xi32, #tpu.memory_space<smem>>
    %400 = arith.index_cast %399 : i32 to index
    %c0_153 = arith.constant 0 : index
    %401 = vector.load %arg2[%400, %c0_153] : memref<100x128xf32, #tpu.memory_space<vmem>>, vector<1x128xf32>
    %402 = arith.addf %338, %401 : vector<1x128xf32>
    %c1_i32_154 = arith.constant 1 : i32
    %403 = arith.addi %2, %c1_i32_154 : i32
    %c8_i32_155 = arith.constant 8 : i32
    %404 = arith.muli %403, %c8_i32_155 : i32
    %405 = arith.addi %404, %c6_i32_150 : i32
    %406 = arith.index_cast %405 : i32 to index
    %407 = memref.load %arg1[%406] : memref<64xi32, #tpu.memory_space<smem>>
    %408 = arith.index_cast %407 : i32 to index
    %c0_156 = arith.constant 0 : index
    %409 = vector.load %arg2[%408, %c0_156] : memref<100x128xf32, #tpu.memory_space<vmem>>, vector<1x128xf32>
    %410 = arith.addf %346, %409 : vector<1x128xf32>
    %c2_i32_157 = arith.constant 2 : i32
    %411 = arith.addi %2, %c2_i32_157 : i32
    %c8_i32_158 = arith.constant 8 : i32
    %412 = arith.muli %411, %c8_i32_158 : i32
    %413 = arith.addi %412, %c6_i32_150 : i32
    %414 = arith.index_cast %413 : i32 to index
    %415 = memref.load %arg1[%414] : memref<64xi32, #tpu.memory_space<smem>>
    %416 = arith.index_cast %415 : i32 to index
    %c0_159 = arith.constant 0 : index
    %417 = vector.load %arg2[%416, %c0_159] : memref<100x128xf32, #tpu.memory_space<vmem>>, vector<1x128xf32>
    %418 = arith.addf %354, %417 : vector<1x128xf32>
    %c3_i32_160 = arith.constant 3 : i32
    %419 = arith.addi %2, %c3_i32_160 : i32
    %c8_i32_161 = arith.constant 8 : i32
    %420 = arith.muli %419, %c8_i32_161 : i32
    %421 = arith.addi %420, %c6_i32_150 : i32
    %422 = arith.index_cast %421 : i32 to index
    %423 = memref.load %arg1[%422] : memref<64xi32, #tpu.memory_space<smem>>
    %424 = arith.index_cast %423 : i32 to index
    %c0_162 = arith.constant 0 : index
    %425 = vector.load %arg2[%424, %c0_162] : memref<100x128xf32, #tpu.memory_space<vmem>>, vector<1x128xf32>
    %426 = arith.addf %362, %425 : vector<1x128xf32>
    %c4_i32_163 = arith.constant 4 : i32
    %427 = arith.addi %2, %c4_i32_163 : i32
    %c8_i32_164 = arith.constant 8 : i32
    %428 = arith.muli %427, %c8_i32_164 : i32
    %429 = arith.addi %428, %c6_i32_150 : i32
    %430 = arith.index_cast %429 : i32 to index
    %431 = memref.load %arg1[%430] : memref<64xi32, #tpu.memory_space<smem>>
    %432 = arith.index_cast %431 : i32 to index
    %c0_165 = arith.constant 0 : index
    %433 = vector.load %arg2[%432, %c0_165] : memref<100x128xf32, #tpu.memory_space<vmem>>, vector<1x128xf32>
    %434 = arith.addf %370, %433 : vector<1x128xf32>
    %c5_i32_166 = arith.constant 5 : i32
    %435 = arith.addi %2, %c5_i32_166 : i32
    %c8_i32_167 = arith.constant 8 : i32
    %436 = arith.muli %435, %c8_i32_167 : i32
    %437 = arith.addi %436, %c6_i32_150 : i32
    %438 = arith.index_cast %437 : i32 to index
    %439 = memref.load %arg1[%438] : memref<64xi32, #tpu.memory_space<smem>>
    %440 = arith.index_cast %439 : i32 to index
    %c0_168 = arith.constant 0 : index
    %441 = vector.load %arg2[%440, %c0_168] : memref<100x128xf32, #tpu.memory_space<vmem>>, vector<1x128xf32>
    %442 = arith.addf %378, %441 : vector<1x128xf32>
    %c6_i32_169 = arith.constant 6 : i32
    %443 = arith.addi %2, %c6_i32_169 : i32
    %c8_i32_170 = arith.constant 8 : i32
    %444 = arith.muli %443, %c8_i32_170 : i32
    %445 = arith.addi %444, %c6_i32_150 : i32
    %446 = arith.index_cast %445 : i32 to index
    %447 = memref.load %arg1[%446] : memref<64xi32, #tpu.memory_space<smem>>
    %448 = arith.index_cast %447 : i32 to index
    %c0_171 = arith.constant 0 : index
    %449 = vector.load %arg2[%448, %c0_171] : memref<100x128xf32, #tpu.memory_space<vmem>>, vector<1x128xf32>
    %450 = arith.addf %386, %449 : vector<1x128xf32>
    %c7_i32_172 = arith.constant 7 : i32
    %451 = arith.addi %2, %c7_i32_172 : i32
    %c8_i32_173 = arith.constant 8 : i32
    %452 = arith.muli %451, %c8_i32_173 : i32
    %453 = arith.addi %452, %c6_i32_150 : i32
    %454 = arith.index_cast %453 : i32 to index
    %455 = memref.load %arg1[%454] : memref<64xi32, #tpu.memory_space<smem>>
    %456 = arith.index_cast %455 : i32 to index
    %c0_174 = arith.constant 0 : index
    %457 = vector.load %arg2[%456, %c0_174] : memref<100x128xf32, #tpu.memory_space<vmem>>, vector<1x128xf32>
    %458 = arith.addf %394, %457 : vector<1x128xf32>
    %c7_i32_175 = arith.constant 7 : i32
    %c0_i32_176 = arith.constant 0 : i32
    %459 = arith.addi %2, %c0_i32_176 : i32
    %c8_i32_177 = arith.constant 8 : i32
    %460 = arith.muli %459, %c8_i32_177 : i32
    %461 = arith.addi %460, %c7_i32_175 : i32
    %462 = arith.index_cast %461 : i32 to index
    %463 = memref.load %arg1[%462] : memref<64xi32, #tpu.memory_space<smem>>
    %464 = arith.index_cast %463 : i32 to index
    %c0_178 = arith.constant 0 : index
    %465 = vector.load %arg2[%464, %c0_178] : memref<100x128xf32, #tpu.memory_space<vmem>>, vector<1x128xf32>
    %466 = arith.addf %402, %465 : vector<1x128xf32>
    %c1_i32_179 = arith.constant 1 : i32
    %467 = arith.addi %2, %c1_i32_179 : i32
    %c8_i32_180 = arith.constant 8 : i32
    %468 = arith.muli %467, %c8_i32_180 : i32
    %469 = arith.addi %468, %c7_i32_175 : i32
    %470 = arith.index_cast %469 : i32 to index
    %471 = memref.load %arg1[%470] : memref<64xi32, #tpu.memory_space<smem>>
    %472 = arith.index_cast %471 : i32 to index
    %c0_181 = arith.constant 0 : index
    %473 = vector.load %arg2[%472, %c0_181] : memref<100x128xf32, #tpu.memory_space<vmem>>, vector<1x128xf32>
    %474 = arith.addf %410, %473 : vector<1x128xf32>
    %c2_i32_182 = arith.constant 2 : i32
    %475 = arith.addi %2, %c2_i32_182 : i32
    %c8_i32_183 = arith.constant 8 : i32
    %476 = arith.muli %475, %c8_i32_183 : i32
    %477 = arith.addi %476, %c7_i32_175 : i32
    %478 = arith.index_cast %477 : i32 to index
    %479 = memref.load %arg1[%478] : memref<64xi32, #tpu.memory_space<smem>>
    %480 = arith.index_cast %479 : i32 to index
    %c0_184 = arith.constant 0 : index
    %481 = vector.load %arg2[%480, %c0_184] : memref<100x128xf32, #tpu.memory_space<vmem>>, vector<1x128xf32>
    %482 = arith.addf %418, %481 : vector<1x128xf32>
    %c3_i32_185 = arith.constant 3 : i32
    %483 = arith.addi %2, %c3_i32_185 : i32
    %c8_i32_186 = arith.constant 8 : i32
    %484 = arith.muli %483, %c8_i32_186 : i32
    %485 = arith.addi %484, %c7_i32_175 : i32
    %486 = arith.index_cast %485 : i32 to index
    %487 = memref.load %arg1[%486] : memref<64xi32, #tpu.memory_space<smem>>
    %488 = arith.index_cast %487 : i32 to index
    %c0_187 = arith.constant 0 : index
    %489 = vector.load %arg2[%488, %c0_187] : memref<100x128xf32, #tpu.memory_space<vmem>>, vector<1x128xf32>
    %490 = arith.addf %426, %489 : vector<1x128xf32>
    %c4_i32_188 = arith.constant 4 : i32
    %491 = arith.addi %2, %c4_i32_188 : i32
    %c8_i32_189 = arith.constant 8 : i32
    %492 = arith.muli %491, %c8_i32_189 : i32
    %493 = arith.addi %492, %c7_i32_175 : i32
    %494 = arith.index_cast %493 : i32 to index
    %495 = memref.load %arg1[%494] : memref<64xi32, #tpu.memory_space<smem>>
    %496 = arith.index_cast %495 : i32 to index
    %c0_190 = arith.constant 0 : index
    %497 = vector.load %arg2[%496, %c0_190] : memref<100x128xf32, #tpu.memory_space<vmem>>, vector<1x128xf32>
    %498 = arith.addf %434, %497 : vector<1x128xf32>
    %c5_i32_191 = arith.constant 5 : i32
    %499 = arith.addi %2, %c5_i32_191 : i32
    %c8_i32_192 = arith.constant 8 : i32
    %500 = arith.muli %499, %c8_i32_192 : i32
    %501 = arith.addi %500, %c7_i32_175 : i32
    %502 = arith.index_cast %501 : i32 to index
    %503 = memref.load %arg1[%502] : memref<64xi32, #tpu.memory_space<smem>>
    %504 = arith.index_cast %503 : i32 to index
    %c0_193 = arith.constant 0 : index
    %505 = vector.load %arg2[%504, %c0_193] : memref<100x128xf32, #tpu.memory_space<vmem>>, vector<1x128xf32>
    %506 = arith.addf %442, %505 : vector<1x128xf32>
    %c6_i32_194 = arith.constant 6 : i32
    %507 = arith.addi %2, %c6_i32_194 : i32
    %c8_i32_195 = arith.constant 8 : i32
    %508 = arith.muli %507, %c8_i32_195 : i32
    %509 = arith.addi %508, %c7_i32_175 : i32
    %510 = arith.index_cast %509 : i32 to index
    %511 = memref.load %arg1[%510] : memref<64xi32, #tpu.memory_space<smem>>
    %512 = arith.index_cast %511 : i32 to index
    %c0_196 = arith.constant 0 : index
    %513 = vector.load %arg2[%512, %c0_196] : memref<100x128xf32, #tpu.memory_space<vmem>>, vector<1x128xf32>
    %514 = arith.addf %450, %513 : vector<1x128xf32>
    %c7_i32_197 = arith.constant 7 : i32
    %515 = arith.addi %2, %c7_i32_197 : i32
    %c8_i32_198 = arith.constant 8 : i32
    %516 = arith.muli %515, %c8_i32_198 : i32
    %517 = arith.addi %516, %c7_i32_175 : i32
    %518 = arith.index_cast %517 : i32 to index
    %519 = memref.load %arg1[%518] : memref<64xi32, #tpu.memory_space<smem>>
    %520 = arith.index_cast %519 : i32 to index
    %c0_199 = arith.constant 0 : index
    %521 = vector.load %arg2[%520, %c0_199] : memref<100x128xf32, #tpu.memory_space<vmem>>, vector<1x128xf32>
    %522 = arith.addf %458, %521 : vector<1x128xf32>
    %c8_i32_200 = arith.constant 8 : i32
    %c8_i32_201 = arith.constant 8 : i32
    %523 = arith.muli %c0_i32, %c8_i32_201 : i32
    %524 = tpu.assume_multiple %523, 8 : i32
    %525 = tpu.concatenate %466, %474, %482, %490, %498, %506, %514, %522 in 0 : vector<1x128xf32>, vector<1x128xf32>, vector<1x128xf32>, vector<1x128xf32>, vector<1x128xf32>, vector<1x128xf32>, vector<1x128xf32>, vector<1x128xf32> -> vector<8x128xf32>
    %526 = arith.index_cast %524 : i32 to index
    %c0_202 = arith.constant 0 : index
    %527 = vector.load %arg6[%526, %c0_202] : memref<8x128xf32, #tpu.memory_space<vmem>>, vector<8x128xf32>
    tpu.vector_store %arg6[%526, %c0_202], %525 {strides = array<i32>} : memref<8x128xf32, #tpu.memory_space<vmem>>, vector<8x128xf32>,
    %c1_i32_203 = arith.constant 1 : i32
    %c0_204 = arith.constant 0 : index
    %c0_205 = arith.constant 0 : index
    %528 = vector.load %arg6[%c0_204, %c0_205] : memref<8x128xf32, #tpu.memory_space<vmem>>, vector<8x128xf32>
    %c0_206 = arith.constant 0 : index
    %c0_207 = arith.constant 0 : index
    %529 = vector.load %arg3[%c0_206, %c0_207] : memref<128x128xf32, #tpu.memory_space<vmem>>, vector<128x128xf32>
    %cst_208 = arith.constant dense<0.000000e+00> : vector<8x128xf32>
    %530 = tpu.matmul %528, %529, %cst_208 {dimension_numbers = #tpu.dot_dimension_numbers<[1], [0], [0], [1], [0, 0, 1, 1], [], []>} : vector<8x128xf32>, vector<128x128xf32>, vector<8x128xf32> -> vector<8x128xf32>
    %c0_209 = arith.constant 0 : index
    %c0_210 = arith.constant 0 : index
    %531 = vector.load %arg4[%c0_209, %c0_210] : memref<1x128xf32, #tpu.memory_space<vmem>>, vector<1x128xf32>
    %532 = vector.broadcast %531 : vector<1x128xf32> to vector<8x128xf32>
    %533 = arith.addf %530, %532 : vector<8x128xf32>
    %c0_211 = arith.constant 0 : index
    %c0_212 = arith.constant 0 : index
    %534 = vector.load %arg5[%c0_211, %c0_212] : memref<8x128xf32, #tpu.memory_space<vmem>>, vector<8x128xf32>
    tpu.vector_store %arg5[%c0_211, %c0_212], %533 {strides = array<i32>} : memref<8x128xf32, #tpu.memory_space<vmem>>, vector<8x128xf32>,
    return
  }
  func.func @transform_0(%arg0: i32, %arg1: memref<64xi32, #tpu.memory_space<smem>>) -> (i32, i32) {
    %c0_i32 = arith.constant 0 : i32
    %c0_i32_0 = arith.constant 0 : i32
    %c0_i32_1 = arith.constant 0 : i32
    return %c0_i32, %c0_i32_0 : i32, i32
  }
  func.func @transform_1(%arg0: i32, %arg1: memref<64xi32, #tpu.memory_space<smem>>) -> (i32, i32) {
    %c0_i32 = arith.constant 0 : i32
    %c0_i32_0 = arith.constant 0 : i32
    %c0_i32_1 = arith.constant 0 : i32
    return %c0_i32, %c0_i32_0 : i32, i32
  }
  func.func @transform_2(%arg0: i32, %arg1: memref<64xi32, #tpu.memory_space<smem>>) -> (i32, i32) {
    %c0_i32 = arith.constant 0 : i32
    %c0_i32_0 = arith.constant 0 : i32
    %c0_i32_1 = arith.constant 0 : i32
    return %c0_i32, %c0_i32_0 : i32, i32
  }
  func.func @transform_3(%arg0: i32, %arg1: memref<64xi32, #tpu.memory_space<smem>>) -> (i32, i32) {
    %c0_i32 = arith.constant 0 : i32
    %c0_i32_0 = arith.constant 0 : i32
    return %arg0, %c0_i32 : i32, i32
  }
}

</mosaic_0001>

<bundles_post_ra>
// kernel: tpu_custom_call.1
= control target key start
LH: loop header
LB: loop body
LE: loop exit
PB: predicated region body
PF: predicated region fallthrough
CT: control target
= control target key end

     0   :  { %s1094_s0 = inlined_call_operand.hbm [shape: s32[64], index: 0, kind: input, shape index: {}]   ;;  %s1095_s1 = inlined_call_operand.hbm [shape: f32[100,128], index: 1, kind: input, shape index: {}]   ;;  %s1096_s2 = inlined_call_operand.hbm [shape: f32[128,128], index: 2, kind: input, shape index: {}]   ;;  %s1097_s3 = inlined_call_operand.vmem [shape: f32[1,128], index: 3, kind: input, shape index: {}]   ;;  %s1098_s4 = inlined_call_operand.hbm [shape: f32[8,128], index: 4, kind: output, shape index: {}]  }
   0x1   :  { %1100 = sst [smem:[#allocation28_spill]] %s1097_s3  ;;  %s736_s17 = scalar_lea.hbm %s1094_s0, 16 }
   0x2   :  { %1101 = sst [smem:[#allocation29_spill]] %s1098_s4  ;;  %p737_p0 = scmp.ne.s32.totalorder %s1094_s0, %s736_s17 }
   0x3   :  { %p740_p1 = scmp.lt.u32.totalorder %s736_s17, %s1094_s0 }
   0x5   :  { %p742_p2 = pnand %p740_p1, %p737_p0 }
   0x7   :  { %745 = shalt.err (!%p742_p2)  }
   0x8   :  { %s820_s22 = smov [#allocation4]  }
   0x9   :  { %10 = dma.hbm_to_smem %s1094_s0, 16, %s820_s22, [#allocation3] }
   0xa   :  { %812 = dma.done.wait [#allocation3], 16 }
   0xb   :  { %813 = vsyncadd [#allocation3], 4294967280 }
   0xc   :  { %12 = sfence }
   0xd   :  { %13 = vsyncpa [#allocation6], 0 }
   0xe   :  { %14 = vsyncpa [#allocation9], 0 }
   0xf   :  { %15 = vsyncpa [#allocation7], 0  ;;  %s821_s25 = smov [#allocation5]   ;;  %s746_s29 = scalar_lea.hbm %s1095_s1, 1664 }
  0x10   :  { %s21_s26 = sshll.u32 %s821_s25, 4  ;;  %p747_p3 = scmp.ne.s32.totalorder %s1095_s1, %s746_s29  ;;  %s22_s26 = int_to_ptr.vmem [resolvable:$true] %s21_s26 }
  0x11   :  { %p750_p4 = scmp.lt.u32.totalorder %s746_s29, %s1095_s1 }
  0x13   :  { %p752_p5 = pnand %p750_p4, %p747_p3 }
  0x15   :  { %755 = shalt.err (!%p752_p5)
}
  0x16   :  { %s756_s0 = scalar_lea.vmem %s22_s26, 1664  ;;  %p761_p7 = scmp.lt.s32.totalorder %s22_s26, %s22_s26 }
  0x17   :  { %p757_p6 = scmp.ne.s32.totalorder %s22_s26, %s756_s0  ;;  %p762_p8 = scmp.lt.s32.totalorder %s756_s0, %s756_s0 }
  0x19   :  { %p763_p9 = por %p762_p8, %p761_p7 }
  0x1b   :  { %p764_p10 = pnand %p763_p9, %p757_p6 }
  0x1d   :  { %767 = shalt.err (!%p764_p10)
}
  0x1e   :  { %s822_s8 = smov 128   ;;  %s823_s9 = smov 8  }
  0x1f   :  { %27 = dma.hbm_to_vmem [thread:$0]  %s1095_s1, 1664, %s22_s26, [#allocation6], %s822_s8, %s822_s8, %s823_s9  }
  0x20   :  { %s824_s12 = smov [#allocation8]   ;;  %s768_s16 = scalar_lea.hbm %s1096_s2, 2048 }
  0x21   :  { %s33_s13 = sshll.u32 %s824_s12, 4  ;;  %p769_p11 = scmp.ne.s32.totalorder %s1096_s2, %s768_s16  ;;  %s34_s13 = int_to_ptr.vmem [resolvable:$true] %s33_s13 }
  0x22   :  { %p772_p12 = scmp.lt.u32.totalorder %s768_s16, %s1096_s2 }
  0x24   :  { %p774_p13 = pnand %p772_p12, %p769_p11 }
  0x26   :  { %777 = shalt.err (!%p774_p13)
}
  0x27   :  { %s778_s21 = scalar_lea.vmem %s34_s13, 2048  ;;  %p783_p1 = scmp.lt.s32.totalorder %s34_s13, %s34_s13 }
  0x28   :  { %p779_p0 = scmp.ne.s32.totalorder %s34_s13, %s778_s21  ;;  %p784_p2 = scmp.lt.s32.totalorder %s778_s21, %s778_s21 }
  0x2a   :  { %p785_p3 = por %p784_p2, %p783_p1 }
  0x2c   :  { %p786_p4 = pnand %p785_p3, %p779_p0 }
  0x2e   :  { %789 = shalt.err (!%p786_p4)
}
  0x2f   :  { %39 = dma.hbm_to_vmem [thread:$0]  %s1096_s2, 2048, %s34_s13, [#allocation9], %s822_s8, %s822_s8, %s823_s9  }
  0x30   :  { %814 = dma.done.wait [#allocation6], 1664  }
  0x31   :  { %815 = vsyncadd [#allocation6], 4294965632 }
  0x32   :  { %816 = dma.done.wait [#allocation9], 2048  }
  0x33   :  { %817 = vsyncadd [#allocation9], 4294965248  ;;  %v825_v0 = vmov 0.0|0.0   ;;  %vm826_vm0 = vmmov 0   ;;  %v827_v1 = vmov 0.0   ;;  %s891_s23 = sld [smem:[#allocation4]] }
  0x34   :  { %703 = vmatprep.subr.bf16.mxu0 %v825_v0  ;;  %700 = vmatprep.mubr.msk.f32.mxu0 %vm826_vm0, %v827_v1  ;;  %s893_s24 = sld [smem:[#allocation4 + $0x8]]  ;;  %v413_v2 = vld [vmem:[#allocation8] sm:$0xff]  ;;  %v414_v3 = vld [vmem:[#allocation8 + $0x8] sm:$0xff]  ;;  %v415_v4 = vld [vmem:[#allocation8 + $0x10] sm:$0xff]  ;;  %s907_s30 = sld [smem:[#allocation4 + $0x1]]  ;;  %vm397_vm1 = vcmask 1040384  }
  0x35   :  { %s895_s25 = sld [smem:[#allocation4 + $0x10]]  ;;  %v704_v5 = vpack.c.bf16 %v414_v3, %v413_v2  ;;  %v416_v6 = vld [vmem:[#allocation8 + $0x18] sm:$0xff]  ;;  %s909_s5 = sld [smem:[#allocation4 + $0x9]]  ;;  %v417_v8 = vld [vmem:[#allocation8 + $0x20] sm:$0xff]  ;;  %v418_v9 = vld [vmem:[#allocation8 + $0x28] sm:$0xff]  ;;  %vm399_vm2 = vcmask 1041408  }
  0x36   :  { %s897_s26 = sld [smem:[#allocation4 + $0x18]]  ;;  %v707_v7 = vpack.c.bf16 %v416_v6, %v415_v4  ;;  %s912_s6 = sld [smem:[#allocation4 + $0x11]]  ;;  %v710_v10 = vpack.c.bf16 %v418_v9, %v417_v8  ;;  %v419_v11 = vld [vmem:[#allocation8 + $0x30] sm:$0xff]  ;;  %v420_v12 = vld [vmem:[#allocation8 + $0x38] sm:$0xff]  ;;  %v421_v14 = vld [vmem:[#allocation8 + $0x40] sm:$0xff]  ;;  %vm401_vm3 = vcmask 1042432  }
  0x37   :  { %s899_s27 = sld [smem:[#allocation4 + $0x20]]  ;;  %705 = vmatpush3.bf16.msra.mxu0 %v704_v5  ;;  %s914_s7 = sld [smem:[#allocation4 + $0x19]]  ;;  %v713_v13 = vpack.c.bf16 %v420_v12, %v419_v11  ;;  %v422_v15 = vld [vmem:[#allocation8 + $0x48] sm:$0xff]  ;;  %v423_v17 = vld [vmem:[#allocation8 + $0x50] sm:$0xff]  ;;  %v424_v18 = vld [vmem:[#allocation8 + $0x58] sm:$0xff]  ;;  %vm403_vm4 = vcmask 1043456  }
  0x38   :  { %s901_s2 = sld [smem:[#allocation4 + $0x28]]  ;;  %706 = vmatprep.subr.bf16.mxu0 %v825_v0  ;;  %s917_s0 = sld [smem:[#allocation4 + $0x21]]  ;;  %v716_v16 = vpack.c.bf16 %v422_v15, %v421_v14  ;;  %v719_v19 = vpack.c.bf16 %v424_v18, %v423_v17  ;;  %v425_v20 = vld [vmem:[#allocation8 + $0x60] sm:$0xff]  ;;  %v426_v21 = vld [vmem:[#allocation8 + $0x68] sm:$0xff]  ;;  %v427_v23 = vld [vmem:[#allocation8 + $0x70] sm:$0xff]  ;;  %vm405_vm5 = vcmask 1044480  }
  0x39   :  { %s903_s28 = sld [smem:[#allocation4 + $0x30]]  ;;  %s919_s8 = sld [smem:[#allocation4 + $0x29]]  ;;  %v722_v22 = vpack.c.bf16 %v426_v21, %v425_v20  ;;  %v428_v24 = vld [vmem:[#allocation8 + $0x78] sm:$0xff]  ;;  %vm407_vm6 = vcmask 1045504   ;;  %vm409_vm7 = vcmask 1046528  }
  0x3a   :  { %s905_s29 = sld [smem:[#allocation4 + $0x38]]  ;;  %s921_s9 = sld [smem:[#allocation4 + $0x31]]  ;;  %v725_v25 = vpack.c.bf16 %v428_v24, %v427_v23 }
  0x3b   :  { %708 = vmatpush3.bf16.msra.mxu0 %v707_v7  ;;  %s923_s10 = sld [smem:[#allocation4 + $0x39]]  ;;  %s925_s11 = sld [smem:[#allocation4 + $0x2]] }
  0x3c   :  { %709 = vmatprep.subr.bf16.mxu0 %v825_v0  ;;  %s928_s12 = sld [smem:[#allocation4 + $0xa]]  ;;  %s944_s19 = sld [smem:[#allocation4 + $0x3]] }
  0x3d   :  { %s930_s13 = sld [smem:[#allocation4 + $0x12]]  ;;  %s946_s20 = sld [smem:[#allocation4 + $0xb]] }
  0x3e   :  { %s932_s14 = sld [smem:[#allocation4 + $0x1a]]  ;;  %s948_s21 = sld [smem:[#allocation4 + $0x13]] }
  0x3f   :  { %711 = vmatpush3.bf16.msra.mxu0 %v710_v10  ;;  %s934_s15 = sld [smem:[#allocation4 + $0x22]]  ;;  %s950_s1 = sld [smem:[#allocation4 + $0x1b]] }
  0x40   :  { %712 = vmatprep.subr.bf16.mxu0 %v825_v0  ;;  %s936_s16 = sld [smem:[#allocation4 + $0x2a]]  ;;  %s953_s22 = sld [smem:[#allocation4 + $0x23]] }
  0x41   :  { %1102 = sst [smem:[#allocation15_spill]] %s923_s10  ;;  %s955_s4 = sld [smem:[#allocation4 + $0x2b]] }
  0x42   :  { %s939_s17 = sld [smem:[#allocation4 + $0x32]]  ;;  %s957_s3 = sld [smem:[#allocation4 + $0x33]] }
  0x43   :  { %714 = vmatpush3.bf16.msra.mxu0 %v713_v13  ;;  %s941_s18 = sld [smem:[#allocation4 + $0x3a]]  ;;  %s108_s10 = scalar_lea.vmem [#allocation5], %s912_s6 }
  0x44   :  { %715 = vmatprep.subr.bf16.mxu0 %v825_v0  ;;  %v109_v32 = vld [vmem:[%s108_s10] sm:$0x1]  ;;  %s153_s6 = scalar_lea.vmem [#allocation5], %s932_s14  ;;  %s994_s10 = sld [smem:[#allocation4 + $0x15]] }
  0x45   :  { %1103 = sst [smem:[#allocation16_spill]] %s934_s15  ;;  %s965_s15 = sld [smem:[#allocation4 + $0x14]]  ;;  %v154_v41 = vld [vmem:[%s153_s6] sm:$0x1] }
  0x46   :  { %1104 = sst [smem:[#allocation17_spill]] %s936_s16  ;;  %s123_s14 = scalar_lea.vmem [#allocation5], %s919_s8 }
  0x47   :  { %717 = vmatpush3.bf16.msra.mxu0 %v716_v16  ;;  %1107 = sst [smem:[#allocation20_spill]] %s953_s22  ;;  %s963_s16 = sld [smem:[#allocation4 + $0xc]]  ;;  %v124_v46 = vld [vmem:[%s123_s14] sm:$0x1] }
  0x48   :  { %1105 = sst [smem:[#allocation18_spill]] %s939_s17  ;;  %718 = vmatprep.subr.bf16.mxu0 %v825_v0  ;;  %s961_s17 = sld [smem:[#allocation4 + $0x4]] }
  0x49   :  { %1106 = sst [smem:[#allocation19_spill]] %s941_s18  ;;  %s959_s18 = sld [smem:[#allocation4 + $0x3b]] }
  0x4a   :  { %1108 = sst [smem:[#allocation21_spill]] %s955_s4  ;;  %s968_s22 = sld [smem:[#allocation4 + $0x1c]] }
  0x4b   :  { %720 = vmatpush3.bf16.msra.mxu0 %v719_v19  ;;  %1109 = sst [smem:[#allocation22_spill]] %s957_s3  ;;  %s51_s3 = scalar_lea.vmem [#allocation5], %s891_s23 }
  0x4c   :  { %721 = vmatprep.subr.bf16.mxu0 %v825_v0  ;;  %1113 = sst [smem:[#allocation26_spill]] %s965_s15  ;;  %v52_v26 = vld [vmem:[%s51_s3] sm:$0x1]  ;;  %s63_s4 = scalar_lea.vmem [#allocation5], %s895_s25 }
  0x4d   :  { %1112 = sst [smem:[#allocation25_spill]] %s963_s16  ;;  %v64_v28 = vld [vmem:[%s63_s4] sm:$0x1]  ;;  %s69_s16 = scalar_lea.vmem [#allocation5], %s897_s26 }
  0x4e   :  { %1111 = sst [smem:[#allocation24_spill]] %s961_s17  ;;  %v70_v29 = vld [vmem:[%s69_s16] sm:$0x1]  ;;  %s98_s17 = scalar_lea.vmem [#allocation5], %s907_s30  ;;  %v110_v38 = vadd.f32 %v109_v32, %v64_v28 }
  0x4f   :  { %1110 = sst [smem:[#allocation23_spill]] %s959_s18  ;;  %723 = vmatpush3.bf16.msra.mxu0 %v722_v22  ;;  %s57_s18 = scalar_lea.vmem [#allocation5], %s893_s24  ;;  %v99_v30 = vld [vmem:[%s98_s17] sm:$0x1] }
  0x50   :  { %724 = vmatprep.subr.bf16.mxu0 %v825_v0  ;;  %1114 = sst [smem:[#allocation27_spill]] %s968_s22  ;;  %v58_v27 = vld [vmem:[%s57_s18] sm:$0x1]  ;;  %s103_s15 = scalar_lea.vmem [#allocation5], %s909_s5  ;;  %v100_v35 = vadd.f32 %v99_v30, %v52_v26 }
  0x51   :  { %v104_v31 = vld [vmem:[%s103_s15] sm:$0x1]  ;;  %s113_s22 = scalar_lea.vmem [#allocation5], %s914_s7  ;;  %s138_s3 = scalar_lea.vmem [#allocation5], %s925_s11 }
  0x52   :  { %v114_v33 = vld [vmem:[%s113_s22] sm:$0x1]  ;;  %s979_s23 = sld [smem:[#allocation4 + $0x24]]  ;;  %v105_v36 = vadd.f32 %v104_v31, %v58_v27  ;;  %s143_s4 = scalar_lea.vmem [#allocation5], %s928_s12 }
  0x53   :  { %726 = vmatpush3.bf16.msra.mxu0 %v725_v25  ;;  %v139_v34 = vld [vmem:[%s138_s3] sm:$0x1]  ;;  %s982_s24 = sld [smem:[#allocation4 + $0x2c]]  ;;  %v115_v39 = vadd.f32 %v114_v33, %v70_v29  ;;  %s148_s26 = scalar_lea.vmem [#allocation5], %s930_s13 }
  0x54   :  { %v144_v37 = vld [vmem:[%s143_s4] sm:$0x1]  ;;  %s984_s25 = sld [smem:[#allocation4 + $0x34]]  ;;  %s989_s5 = sld [smem:[#allocation4 + $0x5]]  ;;  %v140_v48 = vadd.f32 %v139_v34, %v100_v35 }
  0x55   :  { %v149_v40 = vld [vmem:[%s148_s26] sm:$0x1]  ;;  %s987_s30 = sld [smem:[#allocation4 + $0x3c]]  ;;  %s992_s7 = sld [smem:[#allocation4 + $0xd]]  ;;  %v145_v49 = vadd.f32 %v144_v37, %v105_v36  ;;  %v155_v53 = vadd.f32 %v154_v41, %v115_v39 }
  0x56   :  { %s75_s11 = scalar_lea.vmem [#allocation5], %s899_s27  ;;  %s118_s12 = scalar_lea.vmem [#allocation5], %s917_s0  ;;  %v150_v52 = vadd.f32 %v149_v40, %v110_v38 }
  0x57   :  { %v76_v42 = vld [vmem:[%s75_s11] sm:$0x1]  ;;  %s998_s13 = sld [smem:[#allocation4 + $0x1d]]  ;;  %s81_s16 = scalar_lea.vmem [#allocation5], %s901_s2 }
  0x58   :  { %v119_v43 = vld [vmem:[%s118_s12] sm:$0x1]  ;;  %s1000_s15 = sld [smem:[#allocation4 + $0x25]]  ;;  %s87_s17 = scalar_lea.vmem [#allocation5], %s903_s28 }
  0x59   :  { %v82_v44 = vld [vmem:[%s81_s16] sm:$0x1]  ;;  %s128_s18 = scalar_lea.vmem [#allocation5], %s921_s9  ;;  %s1115_s27 = sld [smem:[#allocation15_spill]]  ;;  %v120_v59 = vadd.f32 %v119_v43, %v76_v42 }
  0x5a   :  { %v88_v45 = vld [vmem:[%s87_s17] sm:$0x1]  ;;  %s178_s0 = scalar_lea.vmem [#allocation5], %s944_s19  ;;  %s1116_s22 = sld [smem:[#allocation16_spill]]  ;;  %v125_v0 = vadd.f32 %v124_v46, %v82_v44 }
  0x5b   :  { %v129_v47 = vld [vmem:[%s128_s18] sm:$0x1]  ;;  %s1007_s3 = sld [smem:[#allocation4 + $0x2d]]  ;;  %s93_s2 = scalar_lea.vmem [#allocation5], %s905_s29 }
  0x5c   :  { %v179_v50 = vld [vmem:[%s178_s0] sm:$0x1]  ;;  %s1009_s4 = sld [smem:[#allocation4 + $0x35]]  ;;  %s1117_s28 = sld [smem:[#allocation17_spill]]  ;;  %v130_v1 = vadd.f32 %v129_v47, %v88_v45 }
  0x5d   :  { %v94_v51 = vld [vmem:[%s93_s2] sm:$0x1]  ;;  %s1118_s8 = sld [smem:[#allocation18_spill]]  ;;  %s183_s26 = scalar_lea.vmem [#allocation5], %s946_s20  ;;  %v180_v62 = vadd.f32 %v179_v50, %v140_v48 }
  0x5e   :  { %v184_v54 = vld [vmem:[%s183_s26] sm:$0x1]  ;;  %s1013_s9 = sld [smem:[#allocation4 + $0x3d]]  ;;  %s188_s6 = scalar_lea.vmem [#allocation5], %s948_s21 }
  0x5f   :  { %v189_v55 = vld [vmem:[%s188_s6] sm:$0x1]  ;;  %s1119_s11 = sld [smem:[#allocation19_spill]]  ;;  %s193_s19 = scalar_lea.vmem [#allocation5], %s950_s1  ;;  %v185_v63 = vadd.f32 %v184_v54, %v145_v49 }
  0x60   :  { %v194_v56 = vld [vmem:[%s193_s19] sm:$0x1]  ;;  %s133_s12 = scalar_lea.vmem [#allocation5], %s1115_s27  ;;  %s1120_s16 = sld [smem:[#allocation24_spill]]  ;;  %v190_v3 = vadd.f32 %v189_v55, %v150_v52 }
  0x61   :  { %v134_v57 = vld [vmem:[%s133_s12] sm:$0x1]  ;;  %s158_s17 = scalar_lea.vmem [#allocation5], %s1116_s22  ;;  %s1121_s29 = sld [smem:[#allocation25_spill]]  ;;  %v195_v4 = vadd.f32 %v194_v56, %v155_v53 }
  0x62   :  { %v159_v58 = vld [vmem:[%s158_s17] sm:$0x1]  ;;  %s163_s14 = scalar_lea.vmem [#allocation5], %s1117_s28  ;;  %s1122_s18 = sld [smem:[#allocation26_spill]]  ;;  %v135_v7 = vadd.f32 %v134_v57, %v94_v51 }
  0x63   :  { %v164_v60 = vld [vmem:[%s163_s14] sm:$0x1]  ;;  %s168_s0 = scalar_lea.vmem [#allocation5], %s1118_s8  ;;  %s1123_s20 = sld [smem:[#allocation27_spill]]  ;;  %v160_v12 = vadd.f32 %v159_v58, %v120_v59 }
  0x64   :  { %v169_v61 = vld [vmem:[%s168_s0] sm:$0x1]  ;;  %s1124_s21 = sld [smem:[#allocation20_spill]]  ;;  %s1125_s27 = sld [smem:[#allocation21_spill]]  ;;  %v165_v18 = vadd.f32 %v164_v60, %v125_v0 }
  0x65   :  { %s173_s1 = scalar_lea.vmem [#allocation5], %s1119_s11  ;;  %s1126_s2 = sld [smem:[#allocation22_spill]]  ;;  %v170_v19 = vadd.f32 %v169_v61, %v130_v1 }
  0x66   :  { %v174_v2 = vld [vmem:[%s173_s1] sm:$0x1]  ;;  %s218_s22 = scalar_lea.vmem [#allocation5], %s1120_s16  ;;  %s258_s19 = scalar_lea.vmem [#allocation5], %s989_s5 }
  0x67   :  { %v219_v5 = vld [vmem:[%s218_s22] sm:$0x1]  ;;  %s223_s28 = scalar_lea.vmem [#allocation5], %s1121_s29  ;;  %s263_s16 = scalar_lea.vmem [#allocation5], %s992_s7  ;;  %v175_v23 = vadd.f32 %v174_v2, %v135_v7 }
  0x68   :  { %v224_v6 = vld [vmem:[%s223_s28] sm:$0x1]  ;;  %s228_s8 = scalar_lea.vmem [#allocation5], %s1122_s18  ;;  %v220_v15 = vadd.f32 %v219_v5, %v180_v62  ;;  %s1127_s17 = sld [smem:[#allocation23_spill]] }
  0x69   :  { %v229_v8 = vld [vmem:[%s228_s8] sm:$0x1]  ;;  %s233_s26 = scalar_lea.vmem [#allocation5], %s1123_s20  ;;  %v225_v16 = vadd.f32 %v224_v6, %v185_v63  ;;  %s1031_s29 = sld [smem:[#allocation4 + $0x6]] }
  0x6a   :  { %v234_v9 = vld [vmem:[%s233_s26] sm:$0x1]  ;;  %s198_s6 = scalar_lea.vmem [#allocation5], %s1124_s21  ;;  %s203_s11 = scalar_lea.vmem [#allocation5], %s1125_s27  ;;  %v230_v20 = vadd.f32 %v229_v8, %v190_v3 }
  0x6b   :  { %v199_v10 = vld [vmem:[%s198_s6] sm:$0x1]  ;;  %s208_s12 = scalar_lea.vmem [#allocation5], %s1126_s2  ;;  %s1033_s14 = sld [smem:[#allocation4 + $0xe]]  ;;  %v235_v21 = vadd.f32 %v234_v9, %v195_v4 }
  0x6c   :  { %v259_v11 = vld [vmem:[%s258_s19] sm:$0x1]  ;;  %s268_s5 = scalar_lea.vmem [#allocation5], %s994_s10  ;;  %s1036_s18 = sld [smem:[#allocation4 + $0x16]]  ;;  %v200_v26 = vadd.f32 %v199_v10, %v160_v12 }
  0x6d   :  { %v204_v13 = vld [vmem:[%s203_s11] sm:$0x1]  ;;  %s1038_s0 = sld [smem:[#allocation4 + $0x1e]]  ;;  %s273_s20 = scalar_lea.vmem [#allocation5], %s998_s13  ;;  %v260_v28 = vadd.f32 %v259_v11, %v220_v15 }
  0x6e   :  { %v209_v14 = vld [vmem:[%s208_s12] sm:$0x1]  ;;  %s1041_s7 = sld [smem:[#allocation4 + $0x26]]  ;;  %s213_s1 = scalar_lea.vmem [#allocation5], %s1127_s17  ;;  %v205_v30 = vadd.f32 %v204_v13, %v165_v18 }
  0x6f   :  { %v264_v17 = vld [vmem:[%s263_s16] sm:$0x1]  ;;  %s1043_s21 = sld [smem:[#allocation4 + $0x2e]]  ;;  %s238_s10 = scalar_lea.vmem [#allocation5], %s979_s23  ;;  %v210_v31 = vadd.f32 %v209_v14, %v170_v19 }
  0x70   :  { %v269_v22 = vld [vmem:[%s268_s5] sm:$0x1]  ;;  %s1046_s27 = sld [smem:[#allocation4 + $0x36]]  ;;  %v265_v29 = vadd.f32 %v264_v17, %v225_v16  ;;  %s1051_s13 = sld [smem:[#allocation4 + $0x7]] }
  0x71   :  { %v274_v24 = vld [vmem:[%s273_s20] sm:$0x1]  ;;  %s1048_s22 = sld [smem:[#allocation4 + $0x3e]]  ;;  %s1053_s2 = sld [smem:[#allocation4 + $0xf]]  ;;  %v270_v33 = vadd.f32 %v269_v22, %v230_v20 }
  0x72   :  { %v214_v25 = vld [vmem:[%s213_s1] sm:$0x1]  ;;  %s243_s28 = scalar_lea.vmem [#allocation5], %s982_s24  ;;  %v275_v34 = vadd.f32 %v274_v24, %v235_v21  ;;  %s1056_s8 = sld [smem:[#allocation4 + $0x17]] }
  0x73   :  { %v239_v27 = vld [vmem:[%s238_s10] sm:$0x1]  ;;  %s1058_s23 = sld [smem:[#allocation4 + $0x1f]]  ;;  %v215_v35 = vadd.f32 %v214_v25, %v175_v23  ;;  %s248_s26 = scalar_lea.vmem [#allocation5], %s984_s25 }
  0x74   :  { %v244_v32 = vld [vmem:[%s243_s28] sm:$0x1]  ;;  %s253_s6 = scalar_lea.vmem [#allocation5], %s987_s30  ;;  %s298_s19 = scalar_lea.vmem [#allocation5], %s1031_s29  ;;  %v240_v40 = vadd.f32 %v239_v27, %v200_v26 }
  0x75   :  { %v249_v36 = vld [vmem:[%s248_s26] sm:$0x1]  ;;  %s303_s24 = scalar_lea.vmem [#allocation5], %s1033_s14  ;;  %s308_s11 = scalar_lea.vmem [#allocation5], %s1036_s18  ;;  %v245_v45 = vadd.f32 %v244_v32, %v205_v30 }
  0x76   :  { %v254_v37 = vld [vmem:[%s253_s6] sm:$0x1]  ;;  %s313_s12 = scalar_lea.vmem [#allocation5], %s1038_s0  ;;  %v250_v46 = vadd.f32 %v249_v36, %v210_v31  ;;  %s278_s25 = scalar_lea.vmem [#allocation5], %s1000_s15 }
  0x77   :  { %v299_v38 = vld [vmem:[%s298_s19] sm:$0x1]  ;;  %s283_s30 = scalar_lea.vmem [#allocation5], %s1007_s3  ;;  %v255_v51 = vadd.f32 %v254_v37, %v215_v35  ;;  %s288_s16 = scalar_lea.vmem [#allocation5], %s1009_s4 }
  0x78   :  { %v304_v39 = vld [vmem:[%s303_s24] sm:$0x1]  ;;  %v300_v41 = vadd.f32 %v299_v38, %v260_v28  ;;  %s293_s17 = scalar_lea.vmem [#allocation5], %s1013_s9  ;;  %s318_s29 = scalar_lea.vmem [#allocation5], %s1041_s7 }
  0x79   :  { %v305_v42 = vadd.f32 %v304_v39, %v265_v29  ;;  %v309_v43 = vld [vmem:[%s308_s11] sm:$0x1]  ;;  %s338_s14 = scalar_lea.vmem [#allocation5], %s1051_s13  ;;  %s343_s5 = scalar_lea.vmem [#allocation5], %s1053_s2 }
  0x7a   :  { %v314_v44 = vld [vmem:[%s313_s12] sm:$0x1]  ;;  %v310_v49 = vadd.f32 %v309_v43, %v270_v33  ;;  %s348_s15 = scalar_lea.vmem [#allocation5], %s1056_s8  ;;  %s353_s3 = scalar_lea.vmem [#allocation5], %s1058_s23 }
  0x7b   :  { %v279_v47 = vld [vmem:[%s278_s25] sm:$0x1]  ;;  %v315_v50 = vadd.f32 %v314_v44, %v275_v34  ;;  %s646_s4 = sld [smem:[#allocation4 + $0x27]]  ;;  %s323_s9 = scalar_lea.vmem [#allocation5], %s1043_s21 }
  0x7c   :  { %v284_v48 = vld [vmem:[%s283_s30] sm:$0x1]  ;;  %v280_v57 = vadd.f32 %v279_v47, %v240_v40  ;;  %s647_s18 = sld [smem:[#allocation4 + $0x2f]]  ;;  %s328_s20 = scalar_lea.vmem [#allocation5], %s1046_s27 }
  0x7d   :  { %v289_v52 = vld [vmem:[%s288_s16] sm:$0x1]  ;;  %v285_v62 = vadd.f32 %v284_v48, %v245_v45  ;;  %s648_s0 = sld [smem:[#allocation4 + $0x37]]  ;;  %s333_s1 = scalar_lea.vmem [#allocation5], %s1048_s22 }
  0x7e   :  { %v294_v53 = vld [vmem:[%s293_s17] sm:$0x1]  ;;  %v290_v63 = vadd.f32 %v289_v52, %v250_v46  ;;  %s649_s7 = sld [smem:[#allocation4 + $0x3f]]  ;;  %s1128_s28 = sld [smem:[#allocation28_spill]] }
  0x7f   :  { %v319_v54 = vld [vmem:[%s318_s29] sm:$0x1]  ;;  %v295_v3 = vadd.f32 %v294_v53, %v255_v51  ;;  %s828_s8 = smov [#allocation10]  }
  0x80   :  { %v339_v55 = vld [vmem:[%s338_s14] sm:$0x1]  ;;  %v320_v8 = vadd.f32 %v319_v54, %v280_v57  ;;  %s513_s23 = sshll.u32 %s828_s8, 4  ;;  %s514_s23 = int_to_ptr.vmem [resolvable:$true] %s513_s23 }
  0x81   :  { %v344_v56 = vld [vmem:[%s343_s5] sm:$0x1]  ;;  %v340_v58 = vadd.f32 %v339_v55, %v300_v41  ;;  %s358_s21 = scalar_lea.vmem [#allocation5], %s646_s4  ;;  %s790_s26 = scalar_lea.vmem %s514_s23, 128 }
  0x82   :  { %v345_v59 = vadd.f32 %v344_v56, %v305_v42  ;;  %v349_v60 = vld [vmem:[%s348_s15] sm:$0x1]  ;;  %s363_s27 = scalar_lea.vmem [#allocation5], %s647_s18  ;;  %p791_p5 = scmp.ne.s32.totalorder %s514_s23, %s790_s26 }
  0x83   :  { %v354_v61 = vld [vmem:[%s353_s3] sm:$0x1]  ;;  %v350_v1 = vadd.f32 %v349_v60, %v310_v49  ;;  %s368_s10 = scalar_lea.vmem [#allocation5], %s648_s0  ;;  %p795_p6 = scmp.lt.s32.totalorder %s514_s23, %s514_s23 }
  0x84   :  { %v324_v0 = vld [vmem:[%s323_s9] sm:$0x1]  ;;  %v355_v2 = vadd.f32 %v354_v61, %v315_v50  ;;  %v377_v5 = vrot.slane %v345_v59, 7  ;;  %s373_s22 = scalar_lea.vmem [#allocation5], %s649_s7  ;;  %p796_p7 = scmp.lt.s32.totalorder %s790_s26, %s790_s26 }
  0x85   :  { %v329_v4 = vld [vmem:[%s328_s20] sm:$0x1]  ;;  %v380_v7 = vrot.slane %v350_v1, 6  ;;  %v325_v10 = vadd.f32 %v324_v0, %v285_v62 }
  0x86   :  { %v334_v6 = vld [vmem:[%s333_s1] sm:$0x1]  ;;  %v398_v9 = vsel %vm397_vm1, %v340_v58, %v377_v5  ;;  %v330_v11 = vadd.f32 %v329_v4, %v290_v63  ;;  %v383_v12 = vrot.slane %v355_v2, 5  ;;  %p797_p8 = por %p796_p7, %p795_p6 }
  0x87   :  { %v335_v13 = vadd.f32 %v334_v6, %v295_v3  ;;  %v400_v14 = vsel %vm399_vm2, %v398_v9, %v380_v7  ;;  %v359_v15 = vld [vmem:[%s358_s21] sm:$0x1] }
  0x88   :  { %v360_v16 = vadd.f32 %v359_v15, %v320_v8  ;;  %v364_v17 = vld [vmem:[%s363_s27] sm:$0x1]  ;;  %v402_v22 = vsel %vm401_vm3, %v400_v14, %v383_v12  ;;  %p798_p9 = pnand %p797_p8, %p791_p5 }
  0x89   :  { %v369_v18 = vld [vmem:[%s368_s10] sm:$0x1]  ;;  %v365_v19 = vadd.f32 %v364_v17, %v325_v10 }
  0x8a   :  { %v370_v20 = vadd.f32 %v369_v18, %v330_v11  ;;  %v374_v21 = vld [vmem:[%s373_s22] sm:$0x1]  ;;  %v386_v24 = vrot.slane %v360_v16, 4 }
  0x8b   :  { %v375_v23 = vadd.f32 %v374_v21, %v335_v13  ;;  %v389_v25 = vrot.slane %v365_v19, 3  ;;  %v650_v32 = vld [vmem:[%s1128_s28] ss:$0 sm:$0xff] }
  0x8c   :  { %v392_v26 = vrot.slane %v370_v20, 2  ;;  %v404_v28 = vsel %vm403_vm4, %v402_v22, %v386_v24 }
  0x8d   :  { %v395_v27 = vrot.slane %v375_v23, 1  ;;  %v406_v29 = vsel %vm405_vm5, %v404_v28, %v389_v25 }
  0x8e   :  { %v408_v30 = vsel %vm407_vm6, %v406_v29, %v392_v26 }
  0x8f   :  { %v410_v31 = vsel %vm409_vm7, %v408_v30, %v395_v27 }
  0x90   :  { %701 = vmatmul.mubr.f32.vlgmr.msra.gmra.mrb[0].mxu0 %v410_v31 }
 0x163   :  { %v502_v33 = vpop.f32.mrb[0].mxu0 }
 0x164   :  { %v503_v34 = vadd.f32 %v650_v32, %v502_v33  ;;  %v702_v35 = vpop.f32.mrb[1].mxu0 }
 0x166   :  { %506 = vst [vmem:[#allocation10] sm:$0xff] %v503_v34 }
 0x167   :  { %801 = shalt.err (!%p798_p9)
}
 0x168   :  { %s1129_s24 = sld [smem:[#allocation29_spill]] }
 0x16e   :  { %s802_s11 = scalar_lea.hbm %s1129_s24, 128 }
 0x16f   :  { %p803_p10 = scmp.ne.s32.totalorder %s1129_s24, %s802_s11  ;;  %p806_p11 = scmp.lt.u32.totalorder %s802_s11, %s1129_s24 }
 0x171   :  { %p808_p12 = pnand %p806_p11, %p803_p10 }
 0x173   :  { %811 = shalt.err (!%p808_p12)
}
 0x174   :  { %516 = dma.vmem_to_hbm [thread:$0]  %s514_s23, 128, %s1129_s24, [#allocation7]  }
 0x175   :  { %818 = dma.done.wait [#allocation7], 128  }
 0x176   :  { %819 = vsyncadd [#allocation7], 4294967168 }
 0x177   :  { %520 = vsyncpa [#allocation6], 1 }
 0x178   :  { %521 = vsyncpa [#allocation9], 1 }
 0x179   :  { %522 = vsyncpa [#allocation7], 1 }

// kernel: tpu_custom_call.1
= control target key start
LH: loop header
LB: loop body
LE: loop exit
PB: predicated region body
PF: predicated region fallthrough
CT: control target
= control target key end

     0   :  { %s1094_s0 = inlined_call_operand.hbm [shape: s32[64], index: 0, kind: input, shape index: {}]   ;;  %s1095_s1 = inlined_call_operand.hbm [shape: f32[100,128], index: 1, kind: input, shape index: {}]   ;;  %s1096_s2 = inlined_call_operand.hbm [shape: f32[128,128], index: 2, kind: input, shape index: {}]   ;;  %s1097_s3 = inlined_call_operand.vmem [shape: f32[1,128], index: 3, kind: input, shape index: {}]   ;;  %s1098_s4 = inlined_call_operand.hbm [shape: f32[8,128], index: 4, kind: output, shape index: {}]  }
   0x1   :  { %1100 = sst [smem:[#allocation28_spill]] %s1097_s3  ;;  %s736_s17 = scalar_lea.hbm %s1094_s0, 16 }
   0x2   :  { %1101 = sst [smem:[#allocation29_spill]] %s1098_s4  ;;  %p737_p0 = scmp.ne.s32.totalorder %s1094_s0, %s736_s17 }
   0x3   :  { %p740_p1 = scmp.lt.u32.totalorder %s736_s17, %s1094_s0 }
   0x5   :  { %p742_p2 = pnand %p740_p1, %p737_p0 }
   0x7   :  { %745 = shalt.err (!%p742_p2)  }
   0x8   :  { %s820_s22 = smov [#allocation4]  }
   0x9   :  { %10 = dma.hbm_to_smem %s1094_s0, 16, %s820_s22, [#allocation3] }
   0xa   :  { %812 = dma.done.wait [#allocation3], 16 }
   0xb   :  { %813 = vsyncadd [#allocation3], 4294967280 }
   0xc   :  { %12 = sfence }
   0xd   :  { %13 = vsyncpa [#allocation6], 0 }
   0xe   :  { %14 = vsyncpa [#allocation9], 0 }
   0xf   :  { %15 = vsyncpa [#allocation7], 0  ;;  %s821_s25 = smov [#allocation5]   ;;  %s746_s29 = scalar_lea.hbm %s1095_s1, 1664 }
  0x10   :  { %s21_s26 = sshll.u32 %s821_s25, 4  ;;  %p747_p3 = scmp.ne.s32.totalorder %s1095_s1, %s746_s29  ;;  %s22_s26 = int_to_ptr.vmem [resolvable:$true] %s21_s26 }
  0x11   :  { %p750_p4 = scmp.lt.u32.totalorder %s746_s29, %s1095_s1 }
  0x13   :  { %p752_p5 = pnand %p750_p4, %p747_p3 }
  0x15   :  { %755 = shalt.err (!%p752_p5)
}
  0x16   :  { %s756_s0 = scalar_lea.vmem %s22_s26, 1664  ;;  %p761_p7 = scmp.lt.s32.totalorder %s22_s26, %s22_s26 }
  0x17   :  { %p757_p6 = scmp.ne.s32.totalorder %s22_s26, %s756_s0  ;;  %p762_p8 = scmp.lt.s32.totalorder %s756_s0, %s756_s0 }
  0x19   :  { %p763_p9 = por %p762_p8, %p761_p7 }
  0x1b   :  { %p764_p10 = pnand %p763_p9, %p757_p6 }
  0x1d   :  { %767 = shalt.err (!%p764_p10)
}
  0x1e   :  { %s822_s8 = smov 128   ;;  %s823_s9 = smov 8  }
  0x1f   :  { %27 = dma.hbm_to_vmem [thread:$0]  %s1095_s1, 1664, %s22_s26, [#allocation6], %s822_s8, %s822_s8, %s823_s9  }
  0x20   :  { %s824_s12 = smov [#allocation8]   ;;  %s768_s16 = scalar_lea.hbm %s1096_s2, 2048 }
  0x21   :  { %s33_s13 = sshll.u32 %s824_s12, 4  ;;  %p769_p11 = scmp.ne.s32.totalorder %s1096_s2, %s768_s16  ;;  %s34_s13 = int_to_ptr.vmem [resolvable:$true] %s33_s13 }
  0x22   :  { %p772_p12 = scmp.lt.u32.totalorder %s768_s16, %s1096_s2 }
  0x24   :  { %p774_p13 = pnand %p772_p12, %p769_p11 }
  0x26   :  { %777 = shalt.err (!%p774_p13)
}
  0x27   :  { %s778_s21 = scalar_lea.vmem %s34_s13, 2048  ;;  %p783_p1 = scmp.lt.s32.totalorder %s34_s13, %s34_s13 }
  0x28   :  { %p779_p0 = scmp.ne.s32.totalorder %s34_s13, %s778_s21  ;;  %p784_p2 = scmp.lt.s32.totalorder %s778_s21, %s778_s21 }
  0x2a   :  { %p785_p3 = por %p784_p2, %p783_p1 }
  0x2c   :  { %p786_p4 = pnand %p785_p3, %p779_p0 }
  0x2e   :  { %789 = shalt.err (!%p786_p4)
}
  0x2f   :  { %39 = dma.hbm_to_vmem [thread:$0]  %s1096_s2, 2048, %s34_s13, [#allocation9], %s822_s8, %s822_s8, %s823_s9  }
  0x30   :  { %814 = dma.done.wait [#allocation6], 1664  }
  0x31   :  { %815 = vsyncadd [#allocation6], 4294965632 }
  0x32   :  { %816 = dma.done.wait [#allocation9], 2048  }
  0x33   :  { %817 = vsyncadd [#allocation9], 4294965248  ;;  %v825_v0 = vmov 0.0|0.0   ;;  %vm826_vm0 = vmmov 0   ;;  %v827_v1 = vmov 0.0   ;;  %s891_s23 = sld [smem:[#allocation4]] }
  0x34   :  { %703 = vmatprep.subr.bf16.mxu0 %v825_v0  ;;  %700 = vmatprep.mubr.msk.f32.mxu0 %vm826_vm0, %v827_v1  ;;  %s893_s24 = sld [smem:[#allocation4 + $0x8]]  ;;  %v413_v2 = vld [vmem:[#allocation8] sm:$0xff]  ;;  %v414_v3 = vld [vmem:[#allocation8 + $0x8] sm:$0xff]  ;;  %v415_v4 = vld [vmem:[#allocation8 + $0x10] sm:$0xff]  ;;  %s907_s30 = sld [smem:[#allocation4 + $0x1]]  ;;  %vm397_vm1 = vcmask 1040384  }
  0x35   :  { %s895_s25 = sld [smem:[#allocation4 + $0x10]]  ;;  %v704_v5 = vpack.c.bf16 %v414_v3, %v413_v2  ;;  %v416_v6 = vld [vmem:[#allocation8 + $0x18] sm:$0xff]  ;;  %s909_s5 = sld [smem:[#allocation4 + $0x9]]  ;;  %v417_v8 = vld [vmem:[#allocation8 + $0x20] sm:$0xff]  ;;  %v418_v9 = vld [vmem:[#allocation8 + $0x28] sm:$0xff]  ;;  %vm399_vm2 = vcmask 1041408  }
  0x36   :  { %s897_s26 = sld [smem:[#allocation4 + $0x18]]  ;;  %v707_v7 = vpack.c.bf16 %v416_v6, %v415_v4  ;;  %s912_s6 = sld [smem:[#allocation4 + $0x11]]  ;;  %v710_v10 = vpack.c.bf16 %v418_v9, %v417_v8  ;;  %v419_v11 = vld [vmem:[#allocation8 + $0x30] sm:$0xff]  ;;  %v420_v12 = vld [vmem:[#allocation8 + $0x38] sm:$0xff]  ;;  %v421_v14 = vld [vmem:[#allocation8 + $0x40] sm:$0xff]  ;;  %vm401_vm3 = vcmask 1042432  }
  0x37   :  { %s899_s27 = sld [smem:[#allocation4 + $0x20]]  ;;  %705 = vmatpush3.bf16.msra.mxu0 %v704_v5  ;;  %s914_s7 = sld [smem:[#allocation4 + $0x19]]  ;;  %v713_v13 = vpack.c.bf16 %v420_v12, %v419_v11  ;;  %v422_v15 = vld [vmem:[#allocation8 + $0x48] sm:$0xff]  ;;  %v423_v17 = vld [vmem:[#allocation8 + $0x50] sm:$0xff]  ;;  %v424_v18 = vld [vmem:[#allocation8 + $0x58] sm:$0xff]  ;;  %vm403_vm4 = vcmask 1043456  }
  0x38   :  { %s901_s2 = sld [smem:[#allocation4 + $0x28]]  ;;  %706 = vmatprep.subr.bf16.mxu0 %v825_v0  ;;  %s917_s0 = sld [smem:[#allocation4 + $0x21]]  ;;  %v716_v16 = vpack.c.bf16 %v422_v15, %v421_v14  ;;  %v719_v19 = vpack.c.bf16 %v424_v18, %v423_v17  ;;  %v425_v20 = vld [vmem:[#allocation8 + $0x60] sm:$0xff]  ;;  %v426_v21 = vld [vmem:[#allocation8 + $0x68] sm:$0xff]  ;;  %v427_v23 = vld [vmem:[#allocation8 + $0x70] sm:$0xff]  ;;  %vm405_vm5 = vcmask 1044480  }
  0x39   :  { %s903_s28 = sld [smem:[#allocation4 + $0x30]]  ;;  %s919_s8 = sld [smem:[#allocation4 + $0x29]]  ;;  %v722_v22 = vpack.c.bf16 %v426_v21, %v425_v20  ;;  %v428_v24 = vld [vmem:[#allocation8 + $0x78] sm:$0xff]  ;;  %vm407_vm6 = vcmask 1045504   ;;  %vm409_vm7 = vcmask 1046528  }
  0x3a   :  { %s905_s29 = sld [smem:[#allocation4 + $0x38]]  ;;  %s921_s9 = sld [smem:[#allocation4 + $0x31]]  ;;  %v725_v25 = vpack.c.bf16 %v428_v24, %v427_v23 }
  0x3b   :  { %708 = vmatpush3.bf16.msra.mxu0 %v707_v7  ;;  %s923_s10 = sld [smem:[#allocation4 + $0x39]]  ;;  %s925_s11 = sld [smem:[#allocation4 + $0x2]] }
  0x3c   :  { %709 = vmatprep.subr.bf16.mxu0 %v825_v0  ;;  %s928_s12 = sld [smem:[#allocation4 + $0xa]]  ;;  %s944_s19 = sld [smem:[#allocation4 + $0x3]] }
  0x3d   :  { %s930_s13 = sld [smem:[#allocation4 + $0x12]]  ;;  %s946_s20 = sld [smem:[#allocation4 + $0xb]] }
  0x3e   :  { %s932_s14 = sld [smem:[#allocation4 + $0x1a]]  ;;  %s948_s21 = sld [smem:[#allocation4 + $0x13]] }
  0x3f   :  { %711 = vmatpush3.bf16.msra.mxu0 %v710_v10  ;;  %s934_s15 = sld [smem:[#allocation4 + $0x22]]  ;;  %s950_s1 = sld [smem:[#allocation4 + $0x1b]] }
  0x40   :  { %712 = vmatprep.subr.bf16.mxu0 %v825_v0  ;;  %s936_s16 = sld [smem:[#allocation4 + $0x2a]]  ;;  %s953_s22 = sld [smem:[#allocation4 + $0x23]] }
  0x41   :  { %1102 = sst [smem:[#allocation15_spill]] %s923_s10  ;;  %s955_s4 = sld [smem:[#allocation4 + $0x2b]] }
  0x42   :  { %s939_s17 = sld [smem:[#allocation4 + $0x32]]  ;;  %s957_s3 = sld [smem:[#allocation4 + $0x33]] }
  0x43   :  { %714 = vmatpush3.bf16.msra.mxu0 %v713_v13  ;;  %s941_s18 = sld [smem:[#allocation4 + $0x3a]]  ;;  %s108_s10 = scalar_lea.vmem [#allocation5], %s912_s6 }
  0x44   :  { %715 = vmatprep.subr.bf16.mxu0 %v825_v0  ;;  %v109_v32 = vld [vmem:[%s108_s10] sm:$0x1]  ;;  %s153_s6 = scalar_lea.vmem [#allocation5], %s932_s14  ;;  %s994_s10 = sld [smem:[#allocation4 + $0x15]] }
  0x45   :  { %1103 = sst [smem:[#allocation16_spill]] %s934_s15  ;;  %s965_s15 = sld [smem:[#allocation4 + $0x14]]  ;;  %v154_v41 = vld [vmem:[%s153_s6] sm:$0x1] }
  0x46   :  { %1104 = sst [smem:[#allocation17_spill]] %s936_s16  ;;  %s123_s14 = scalar_lea.vmem [#allocation5], %s919_s8 }
  0x47   :  { %717 = vmatpush3.bf16.msra.mxu0 %v716_v16  ;;  %1107 = sst [smem:[#allocation20_spill]] %s953_s22  ;;  %s963_s16 = sld [smem:[#allocation4 + $0xc]]  ;;  %v124_v46 = vld [vmem:[%s123_s14] sm:$0x1] }
  0x48   :  { %1105 = sst [smem:[#allocation18_spill]] %s939_s17  ;;  %718 = vmatprep.subr.bf16.mxu0 %v825_v0  ;;  %s961_s17 = sld [smem:[#allocation4 + $0x4]] }
  0x49   :  { %1106 = sst [smem:[#allocation19_spill]] %s941_s18  ;;  %s959_s18 = sld [smem:[#allocation4 + $0x3b]] }
  0x4a   :  { %1108 = sst [smem:[#allocation21_spill]] %s955_s4  ;;  %s968_s22 = sld [smem:[#allocation4 + $0x1c]] }
  0x4b   :  { %720 = vmatpush3.bf16.msra.mxu0 %v719_v19  ;;  %1109 = sst [smem:[#allocation22_spill]] %s957_s3  ;;  %s51_s3 = scalar_lea.vmem [#allocation5], %s891_s23 }
  0x4c   :  { %721 = vmatprep.subr.bf16.mxu0 %v825_v0  ;;  %1113 = sst [smem:[#allocation26_spill]] %s965_s15  ;;  %v52_v26 = vld [vmem:[%s51_s3] sm:$0x1]  ;;  %s63_s4 = scalar_lea.vmem [#allocation5], %s895_s25 }
  0x4d   :  { %1112 = sst [smem:[#allocation25_spill]] %s963_s16  ;;  %v64_v28 = vld [vmem:[%s63_s4] sm:$0x1]  ;;  %s69_s16 = scalar_lea.vmem [#allocation5], %s897_s26 }
  0x4e   :  { %1111 = sst [smem:[#allocation24_spill]] %s961_s17  ;;  %v70_v29 = vld [vmem:[%s69_s16] sm:$0x1]  ;;  %s98_s17 = scalar_lea.vmem [#allocation5], %s907_s30  ;;  %v110_v38 = vadd.f32 %v109_v32, %v64_v28 }
  0x4f   :  { %1110 = sst [smem:[#allocation23_spill]] %s959_s18  ;;  %723 = vmatpush3.bf16.msra.mxu0 %v722_v22  ;;  %s57_s18 = scalar_lea.vmem [#allocation5], %s893_s24  ;;  %v99_v30 = vld [vmem:[%s98_s17] sm:$0x1] }
  0x50   :  { %724 = vmatprep.subr.bf16.mxu0 %v825_v0  ;;  %1114 = sst [smem:[#allocation27_spill]] %s968_s22  ;;  %v58_v27 = vld [vmem:[%s57_s18] sm:$0x1]  ;;  %s103_s15 = scalar_lea.vmem [#allocation5], %s909_s5  ;;  %v100_v35 = vadd.f32 %v99_v30, %v52_v26 }
  0x51   :  { %v104_v31 = vld [vmem:[%s103_s15] sm:$0x1]  ;;  %s113_s22 = scalar_lea.vmem [#allocation5], %s914_s7  ;;  %s138_s3 = scalar_lea.vmem [#allocation5], %s925_s11 }
  0x52   :  { %v114_v33 = vld [vmem:[%s113_s22] sm:$0x1]  ;;  %s979_s23 = sld [smem:[#allocation4 + $0x24]]  ;;  %v105_v36 = vadd.f32 %v104_v31, %v58_v27  ;;  %s143_s4 = scalar_lea.vmem [#allocation5], %s928_s12 }
  0x53   :  { %726 = vmatpush3.bf16.msra.mxu0 %v725_v25  ;;  %v139_v34 = vld [vmem:[%s138_s3] sm:$0x1]  ;;  %s982_s24 = sld [smem:[#allocation4 + $0x2c]]  ;;  %v115_v39 = vadd.f32 %v114_v33, %v70_v29  ;;  %s148_s26 = scalar_lea.vmem [#allocation5], %s930_s13 }
  0x54   :  { %v144_v37 = vld [vmem:[%s143_s4] sm:$0x1]  ;;  %s984_s25 = sld [smem:[#allocation4 + $0x34]]  ;;  %s989_s5 = sld [smem:[#allocation4 + $0x5]]  ;;  %v140_v48 = vadd.f32 %v139_v34, %v100_v35 }
  0x55   :  { %v149_v40 = vld [vmem:[%s148_s26] sm:$0x1]  ;;  %s987_s30 = sld [smem:[#allocation4 + $0x3c]]  ;;  %s992_s7 = sld [smem:[#allocation4 + $0xd]]  ;;  %v145_v49 = vadd.f32 %v144_v37, %v105_v36  ;;  %v155_v53 = vadd.f32 %v154_v41, %v115_v39 }
  0x56   :  { %s75_s11 = scalar_lea.vmem [#allocation5], %s899_s27  ;;  %s118_s12 = scalar_lea.vmem [#allocation5], %s917_s0  ;;  %v150_v52 = vadd.f32 %v149_v40, %v110_v38 }
  0x57   :  { %v76_v42 = vld [vmem:[%s75_s11] sm:$0x1]  ;;  %s998_s13 = sld [smem:[#allocation4 + $0x1d]]  ;;  %s81_s16 = scalar_lea.vmem [#allocation5], %s901_s2 }
  0x58   :  { %v119_v43 = vld [vmem:[%s118_s12] sm:$0x1]  ;;  %s1000_s15 = sld [smem:[#allocation4 + $0x25]]  ;;  %s87_s17 = scalar_lea.vmem [#allocation5], %s903_s28 }
  0x59   :  { %v82_v44 = vld [vmem:[%s81_s16] sm:$0x1]  ;;  %s128_s18 = scalar_lea.vmem [#allocation5], %s921_s9  ;;  %s1115_s27 = sld [smem:[#allocation15_spill]]  ;;  %v120_v59 = vadd.f32 %v119_v43, %v76_v42 }
  0x5a   :  { %v88_v45 = vld [vmem:[%s87_s17] sm:$0x1]  ;;  %s178_s0 = scalar_lea.vmem [#allocation5], %s944_s19  ;;  %s1116_s22 = sld [smem:[#allocation16_spill]]  ;;  %v125_v0 = vadd.f32 %v124_v46, %v82_v44 }
  0x5b   :  { %v129_v47 = vld [vmem:[%s128_s18] sm:$0x1]  ;;  %s1007_s3 = sld [smem:[#allocation4 + $0x2d]]  ;;  %s93_s2 = scalar_lea.vmem [#allocation5], %s905_s29 }
  0x5c   :  { %v179_v50 = vld [vmem:[%s178_s0] sm:$0x1]  ;;  %s1009_s4 = sld [smem:[#allocation4 + $0x35]]  ;;  %s1117_s28 = sld [smem:[#allocation17_spill]]  ;;  %v130_v1 = vadd.f32 %v129_v47, %v88_v45 }
  0x5d   :  { %v94_v51 = vld [vmem:[%s93_s2] sm:$0x1]  ;;  %s1118_s8 = sld [smem:[#allocation18_spill]]  ;;  %s183_s26 = scalar_lea.vmem [#allocation5], %s946_s20  ;;  %v180_v62 = vadd.f32 %v179_v50, %v140_v48 }
  0x5e   :  { %v184_v54 = vld [vmem:[%s183_s26] sm:$0x1]  ;;  %s1013_s9 = sld [smem:[#allocation4 + $0x3d]]  ;;  %s188_s6 = scalar_lea.vmem [#allocation5], %s948_s21 }
  0x5f   :  { %v189_v55 = vld [vmem:[%s188_s6] sm:$0x1]  ;;  %s1119_s11 = sld [smem:[#allocation19_spill]]  ;;  %s193_s19 = scalar_lea.vmem [#allocation5], %s950_s1  ;;  %v185_v63 = vadd.f32 %v184_v54, %v145_v49 }
  0x60   :  { %v194_v56 = vld [vmem:[%s193_s19] sm:$0x1]  ;;  %s133_s12 = scalar_lea.vmem [#allocation5], %s1115_s27  ;;  %s1120_s16 = sld [smem:[#allocation24_spill]]  ;;  %v190_v3 = vadd.f32 %v189_v55, %v150_v52 }
  0x61   :  { %v134_v57 = vld [vmem:[%s133_s12] sm:$0x1]  ;;  %s158_s17 = scalar_lea.vmem [#allocation5], %s1116_s22  ;;  %s1121_s29 = sld [smem:[#allocation25_spill]]  ;;  %v195_v4 = vadd.f32 %v194_v56, %v155_v53 }
  0x62   :  { %v159_v58 = vld [vmem:[%s158_s17] sm:$0x1]  ;;  %s163_s14 = scalar_lea.vmem [#allocation5], %s1117_s28  ;;  %s1122_s18 = sld [smem:[#allocation26_spill]]  ;;  %v135_v7 = vadd.f32 %v134_v57, %v94_v51 }
  0x63   :  { %v164_v60 = vld [vmem:[%s163_s14] sm:$0x1]  ;;  %s168_s0 = scalar_lea.vmem [#allocation5], %s1118_s8  ;;  %s1123_s20 = sld [smem:[#allocation27_spill]]  ;;  %v160_v12 = vadd.f32 %v159_v58, %v120_v59 }
  0x64   :  { %v169_v61 = vld [vmem:[%s168_s0] sm:$0x1]  ;;  %s1124_s21 = sld [smem:[#allocation20_spill]]  ;;  %s1125_s27 = sld [smem:[#allocation21_spill]]  ;;  %v165_v18 = vadd.f32 %v164_v60, %v125_v0 }
  0x65   :  { %s173_s1 = scalar_lea.vmem [#allocation5], %s1119_s11  ;;  %s1126_s2 = sld [smem:[#allocation22_spill]]  ;;  %v170_v19 = vadd.f32 %v169_v61, %v130_v1 }
  0x66   :  { %v174_v2 = vld [vmem:[%s173_s1] sm:$0x1]  ;;  %s218_s22 = scalar_lea.vmem [#allocation5], %s1120_s16  ;;  %s258_s19 = scalar_lea.vmem [#allocation5], %s989_s5 }
  0x67   :  { %v219_v5 = vld [vmem:[%s218_s22] sm:$0x1]  ;;  %s223_s28 = scalar_lea.vmem [#allocation5], %s1121_s29  ;;  %s263_s16 = scalar_lea.vmem [#allocation5], %s992_s7  ;;  %v175_v23 = vadd.f32 %v174_v2, %v135_v7 }
  0x68   :  { %v224_v6 = vld [vmem:[%s223_s28] sm:$0x1]  ;;  %s228_s8 = scalar_lea.vmem [#allocation5], %s1122_s18  ;;  %v220_v15 = vadd.f32 %v219_v5, %v180_v62  ;;  %s1127_s17 = sld [smem:[#allocation23_spill]] }
  0x69   :  { %v229_v8 = vld [vmem:[%s228_s8] sm:$0x1]  ;;  %s233_s26 = scalar_lea.vmem [#allocation5], %s1123_s20  ;;  %v225_v16 = vadd.f32 %v224_v6, %v185_v63  ;;  %s1031_s29 = sld [smem:[#allocation4 + $0x6]] }
  0x6a   :  { %v234_v9 = vld [vmem:[%s233_s26] sm:$0x1]  ;;  %s198_s6 = scalar_lea.vmem [#allocation5], %s1124_s21  ;;  %s203_s11 = scalar_lea.vmem [#allocation5], %s1125_s27  ;;  %v230_v20 = vadd.f32 %v229_v8, %v190_v3 }
  0x6b   :  { %v199_v10 = vld [vmem:[%s198_s6] sm:$0x1]  ;;  %s208_s12 = scalar_lea.vmem [#allocation5], %s1126_s2  ;;  %s1033_s14 = sld [smem:[#allocation4 + $0xe]]  ;;  %v235_v21 = vadd.f32 %v234_v9, %v195_v4 }
  0x6c   :  { %v259_v11 = vld [vmem:[%s258_s19] sm:$0x1]  ;;  %s268_s5 = scalar_lea.vmem [#allocation5], %s994_s10  ;;  %s1036_s18 = sld [smem:[#allocation4 + $0x16]]  ;;  %v200_v26 = vadd.f32 %v199_v10, %v160_v12 }
  0x6d   :  { %v204_v13 = vld [vmem:[%s203_s11] sm:$0x1]  ;;  %s1038_s0 = sld [smem:[#allocation4 + $0x1e]]  ;;  %s273_s20 = scalar_lea.vmem [#allocation5], %s998_s13  ;;  %v260_v28 = vadd.f32 %v259_v11, %v220_v15 }
  0x6e   :  { %v209_v14 = vld [vmem:[%s208_s12] sm:$0x1]  ;;  %s1041_s7 = sld [smem:[#allocation4 + $0x26]]  ;;  %s213_s1 = scalar_lea.vmem [#allocation5], %s1127_s17  ;;  %v205_v30 = vadd.f32 %v204_v13, %v165_v18 }
  0x6f   :  { %v264_v17 = vld [vmem:[%s263_s16] sm:$0x1]  ;;  %s1043_s21 = sld [smem:[#allocation4 + $0x2e]]  ;;  %s238_s10 = scalar_lea.vmem [#allocation5], %s979_s23  ;;  %v210_v31 = vadd.f32 %v209_v14, %v170_v19 }
  0x70   :  { %v269_v22 = vld [vmem:[%s268_s5] sm:$0x1]  ;;  %s1046_s27 = sld [smem:[#allocation4 + $0x36]]  ;;  %v265_v29 = vadd.f32 %v264_v17, %v225_v16  ;;  %s1051_s13 = sld [smem:[#allocation4 + $0x7]] }
  0x71   :  { %v274_v24 = vld [vmem:[%s273_s20] sm:$0x1]  ;;  %s1048_s22 = sld [smem:[#allocation4 + $0x3e]]  ;;  %s1053_s2 = sld [smem:[#allocation4 + $0xf]]  ;;  %v270_v33 = vadd.f32 %v269_v22, %v230_v20 }
  0x72   :  { %v214_v25 = vld [vmem:[%s213_s1] sm:$0x1]  ;;  %s243_s28 = scalar_lea.vmem [#allocation5], %s982_s24  ;;  %v275_v34 = vadd.f32 %v274_v24, %v235_v21  ;;  %s1056_s8 = sld [smem:[#allocation4 + $0x17]] }
  0x73   :  { %v239_v27 = vld [vmem:[%s238_s10] sm:$0x1]  ;;  %s1058_s23 = sld [smem:[#allocation4 + $0x1f]]  ;;  %v215_v35 = vadd.f32 %v214_v25, %v175_v23  ;;  %s248_s26 = scalar_lea.vmem [#allocation5], %s984_s25 }
  0x74   :  { %v244_v32 = vld [vmem:[%s243_s28] sm:$0x1]  ;;  %s253_s6 = scalar_lea.vmem [#allocation5], %s987_s30  ;;  %s298_s19 = scalar_lea.vmem [#allocation5], %s1031_s29  ;;  %v240_v40 = vadd.f32 %v239_v27, %v200_v26 }
  0x75   :  { %v249_v36 = vld [vmem:[%s248_s26] sm:$0x1]  ;;  %s303_s24 = scalar_lea.vmem [#allocation5], %s1033_s14  ;;  %s308_s11 = scalar_lea.vmem [#allocation5], %s1036_s18  ;;  %v245_v45 = vadd.f32 %v244_v32, %v205_v30 }
  0x76   :  { %v254_v37 = vld [vmem:[%s253_s6] sm:$0x1]  ;;  %s313_s12 = scalar_lea.vmem [#allocation5], %s1038_s0  ;;  %v250_v46 = vadd.f32 %v249_v36, %v210_v31  ;;  %s278_s25 = scalar_lea.vmem [#allocation5], %s1000_s15 }
  0x77   :  { %v299_v38 = vld [vmem:[%s298_s19] sm:$0x1]  ;;  %s283_s30 = scalar_lea.vmem [#allocation5], %s1007_s3  ;;  %v255_v51 = vadd.f32 %v254_v37, %v215_v35  ;;  %s288_s16 = scalar_lea.vmem [#allocation5], %s1009_s4 }
  0x78   :  { %v304_v39 = vld [vmem:[%s303_s24] sm:$0x1]  ;;  %v300_v41 = vadd.f32 %v299_v38, %v260_v28  ;;  %s293_s17 = scalar_lea.vmem [#allocation5], %s1013_s9  ;;  %s318_s29 = scalar_lea.vmem [#allocation5], %s1041_s7 }
  0x79   :  { %v305_v42 = vadd.f32 %v304_v39, %v265_v29  ;;  %v309_v43 = vld [vmem:[%s308_s11] sm:$0x1]  ;;  %s338_s14 = scalar_lea.vmem [#allocation5], %s1051_s13  ;;  %s343_s5 = scalar_lea.vmem [#allocation5], %s1053_s2 }
  0x7a   :  { %v314_v44 = vld [vmem:[%s313_s12] sm:$0x1]  ;;  %v310_v49 = vadd.f32 %v309_v43, %v270_v33  ;;  %s348_s15 = scalar_lea.vmem [#allocation5], %s1056_s8  ;;  %s353_s3 = scalar_lea.vmem [#allocation5], %s1058_s23 }
  0x7b   :  { %v279_v47 = vld [vmem:[%s278_s25] sm:$0x1]  ;;  %v315_v50 = vadd.f32 %v314_v44, %v275_v34  ;;  %s646_s4 = sld [smem:[#allocation4 + $0x27]]  ;;  %s323_s9 = scalar_lea.vmem [#allocation5], %s1043_s21 }
  0x7c   :  { %v284_v48 = vld [vmem:[%s283_s30] sm:$0x1]  ;;  %v280_v57 = vadd.f32 %v279_v47, %v240_v40  ;;  %s647_s18 = sld [smem:[#allocation4 + $0x2f]]  ;;  %s328_s20 = scalar_lea.vmem [#allocation5], %s1046_s27 }
  0x7d   :  { %v289_v52 = vld [vmem:[%s288_s16] sm:$0x1]  ;;  %v285_v62 = vadd.f32 %v284_v48, %v245_v45  ;;  %s648_s0 = sld [smem:[#allocation4 + $0x37]]  ;;  %s333_s1 = scalar_lea.vmem [#allocation5], %s1048_s22 }
  0x7e   :  { %v294_v53 = vld [vmem:[%s293_s17] sm:$0x1]  ;;  %v290_v63 = vadd.f32 %v289_v52, %v250_v46  ;;  %s649_s7 = sld [smem:[#allocation4 + $0x3f]]  ;;  %s1128_s28 = sld [smem:[#allocation28_spill]] }
  0x7f   :  { %v319_v54 = vld [vmem:[%s318_s29] sm:$0x1]  ;;  %v295_v3 = vadd.f32 %v294_v53, %v255_v51  ;;  %s828_s8 = smov [#allocation10]  }
  0x80   :  { %v339_v55 = vld [vmem:[%s338_s14] sm:$0x1]  ;;  %v320_v8 = vadd.f32 %v319_v54, %v280_v57  ;;  %s513_s23 = sshll.u32 %s828_s8, 4  ;;  %s514_s23 = int_to_ptr.vmem [resolvable:$true] %s513_s23 }
  0x81   :  { %v344_v56 = vld [vmem:[%s343_s5] sm:$0x1]  ;;  %v340_v58 = vadd.f32 %v339_v55, %v300_v41  ;;  %s358_s21 = scalar_lea.vmem [#allocation5], %s646_s4  ;;  %s790_s26 = scalar_lea.vmem %s514_s23, 128 }
  0x82   :  { %v345_v59 = vadd.f32 %v344_v56, %v305_v42  ;;  %v349_v60 = vld [vmem:[%s348_s15] sm:$0x1]  ;;  %s363_s27 = scalar_lea.vmem [#allocation5], %s647_s18  ;;  %p791_p5 = scmp.ne.s32.totalorder %s514_s23, %s790_s26 }
  0x83   :  { %v354_v61 = vld [vmem:[%s353_s3] sm:$0x1]  ;;  %v350_v1 = vadd.f32 %v349_v60, %v310_v49  ;;  %s368_s10 = scalar_lea.vmem [#allocation5], %s648_s0  ;;  %p795_p6 = scmp.lt.s32.totalorder %s514_s23, %s514_s23 }
  0x84   :  { %v324_v0 = vld [vmem:[%s323_s9] sm:$0x1]  ;;  %v355_v2 = vadd.f32 %v354_v61, %v315_v50  ;;  %v377_v5 = vrot.slane %v345_v59, 7  ;;  %s373_s22 = scalar_lea.vmem [#allocation5], %s649_s7  ;;  %p796_p7 = scmp.lt.s32.totalorder %s790_s26, %s790_s26 }
  0x85   :  { %v329_v4 = vld [vmem:[%s328_s20] sm:$0x1]  ;;  %v380_v7 = vrot.slane %v350_v1, 6  ;;  %v325_v10 = vadd.f32 %v324_v0, %v285_v62 }
  0x86   :  { %v334_v6 = vld [vmem:[%s333_s1] sm:$0x1]  ;;  %v398_v9 = vsel %vm397_vm1, %v340_v58, %v377_v5  ;;  %v330_v11 = vadd.f32 %v329_v4, %v290_v63  ;;  %v383_v12 = vrot.slane %v355_v2, 5  ;;  %p797_p8 = por %p796_p7, %p795_p6 }
  0x87   :  { %v335_v13 = vadd.f32 %v334_v6, %v295_v3  ;;  %v400_v14 = vsel %vm399_vm2, %v398_v9, %v380_v7  ;;  %v359_v15 = vld [vmem:[%s358_s21] sm:$0x1] }
  0x88   :  { %v360_v16 = vadd.f32 %v359_v15, %v320_v8  ;;  %v364_v17 = vld [vmem:[%s363_s27] sm:$0x1]  ;;  %v402_v22 = vsel %vm401_vm3, %v400_v14, %v383_v12  ;;  %p798_p9 = pnand %p797_p8, %p791_p5 }
  0x89   :  { %v369_v18 = vld [vmem:[%s368_s10] sm:$0x1]  ;;  %v365_v19 = vadd.f32 %v364_v17, %v325_v10 }
  0x8a   :  { %v370_v20 = vadd.f32 %v369_v18, %v330_v11  ;;  %v374_v21 = vld [vmem:[%s373_s22] sm:$0x1]  ;;  %v386_v24 = vrot.slane %v360_v16, 4 }
  0x8b   :  { %v375_v23 = vadd.f32 %v374_v21, %v335_v13  ;;  %v389_v25 = vrot.slane %v365_v19, 3  ;;  %v650_v32 = vld [vmem:[%s1128_s28] ss:$0 sm:$0xff] }
  0x8c   :  { %v392_v26 = vrot.slane %v370_v20, 2  ;;  %v404_v28 = vsel %vm403_vm4, %v402_v22, %v386_v24 }
  0x8d   :  { %v395_v27 = vrot.slane %v375_v23, 1  ;;  %v406_v29 = vsel %vm405_vm5, %v404_v28, %v389_v25 }
  0x8e   :  { %v408_v30 = vsel %vm407_vm6, %v406_v29, %v392_v26 }
  0x8f   :  { %v410_v31 = vsel %vm409_vm7, %v408_v30, %v395_v27 }
  0x90   :  { %701 = vmatmul.mubr.f32.vlgmr.msra.gmra.mrb[0].mxu0 %v410_v31 }
 0x163   :  { %v502_v33 = vpop.f32.mrb[0].mxu0 }
 0x164   :  { %v503_v34 = vadd.f32 %v650_v32, %v502_v33  ;;  %v702_v35 = vpop.f32.mrb[1].mxu0 }
 0x166   :  { %506 = vst [vmem:[#allocation10] sm:$0xff] %v503_v34 }
 0x167   :  { %801 = shalt.err (!%p798_p9)
}
 0x168   :  { %s1129_s24 = sld [smem:[#allocation29_spill]] }
 0x16e   :  { %s802_s11 = scalar_lea.hbm %s1129_s24, 128 }
 0x16f   :  { %p803_p10 = scmp.ne.s32.totalorder %s1129_s24, %s802_s11  ;;  %p806_p11 = scmp.lt.u32.totalorder %s802_s11, %s1129_s24 }
 0x171   :  { %p808_p12 = pnand %p806_p11, %p803_p10 }
 0x173   :  { %811 = shalt.err (!%p808_p12)
}
 0x174   :  { %516 = dma.vmem_to_hbm [thread:$0]  %s514_s23, 128, %s1129_s24, [#allocation7]  }
 0x175   :  { %818 = dma.done.wait [#allocation7], 128  }
 0x176   :  { %819 = vsyncadd [#allocation7], 4294967168 }
 0x177   :  { %520 = vsyncpa [#allocation6], 1 }
 0x178   :  { %521 = vsyncpa [#allocation9], 1 }
 0x179   :  { %522 = vsyncpa [#allocation7], 1 }

</bundles_post_ra>
